<compile_context>
chip_gen: v5e
topology: v5e:2x2
jax: 0.10.0
libtpu: 0.0.40
codegen_flags: <defaults>
</compile_context>

<pallas_src>
from functools import partial

import jax
import jax.numpy as jnp
import numpy as np
from jax import lax
from jax.experimental import pallas as pl
from jax.experimental.pallas import tpu as pltpu


# ----------------------------------------------------------------------------
# Generation-aware VMEM budget (v7x: 64 MiB/TC, v5e/v6e: 128 MiB).
# ----------------------------------------------------------------------------
def _derive_vmem_budget():
    try:
        cap = int(pltpu.get_tpu_info().vmem_capacity_bytes)
    except Exception:
        cap = 64 * 1024 * 1024            # conservative fallback (v7x per-TC)
    limit = min((cap * 3) // 4, 100 * 1024 * 1024)
    budget = (limit * 5) // 8             # headroom for double-buffering etc.
    return limit, budget


_VMEM_LIMIT_BYTES, _VMEM_TILE_BUDGET = _derive_vmem_budget()

# bf16 operands + f32 accumulation is the native fast MXU path on all gens.
_MXU_DTYPE = jnp.bfloat16


# ----------------------------------------------------------------------------
# Tiling helpers
# ----------------------------------------------------------------------------
def _largest_divisor_tile(L, target, quantum):
    """Largest multiple-of-`quantum` divisor of L that is <= target.
    Falls back to the full extent L (always a legal block).
    TODO(synk): pad/mask ragged L instead of the full-extent fallback so
    prime-ish sequence lengths cannot blow the VMEM budget."""
    if L <= target:
        return L
    t = (target // quantum) * quantum
    while t >= quantum:
        if L % t == 0:
            return t
        t -= quantum
    return L


def _attn_tiles(Lq, Lk, d, itemsize):
    """Flash tiles: keep tk near the MXU width, grow tq as far as VMEM allows
    (K/V HBM traffic scales as Lk*d*(Lq/tq)).  Sublane quantum is dtype-aware."""
    quantum = {4: 8, 2: 16, 1: 32}.get(itemsize, 8)

    def fits(tq, tk):
        blocks = 2 * tq * d * itemsize            # Q   (double buffered)
        blocks += 2 * 2 * tk * d * itemsize       # K,V (double buffered)
        blocks += 2 * tq * d * itemsize           # O   (double buffered)
        scratch = tq * d * 4 + 2 * tq * 4         # acc + m + l (f32)
        work = 2 * tq * tk * 4                    # scores + p (f32)
        work += tq * d * 4                        # pv temp
        work += 2 * (tq + 2 * tk) * d * 2         # bf16 operand copies
        return blocks + scratch + work <= _VMEM_TILE_BUDGET

    for tk_target in (256, 128, 64, 32, 16, quantum):
        tk = _largest_divisor_tile(Lk, tk_target, quantum)
        for tq_target in (2048, 1024, 512, 256, 128, 64, 32, 16, quantum):
            tq = _largest_divisor_tile(Lq, tq_target, quantum)
            if fits(tq, tk):
                return tq, tk
    return (_largest_divisor_tile(Lq, quantum, quantum),
            _largest_divisor_tile(Lk, quantum, quantum))


# ----------------------------------------------------------------------------
# Fused to_q / to_k / to_v 3x3 conv (padding=1, stride=1), flat-spatial layout.
# Per image: input slab (C, (H+3)*(W+2)); tap (dy,dx) = lane slice at offset
# dy*(W+2)+dx of length H*(W+2); output (C, H*(W+2)) with garbage in the two
# padded-width columns of every row (dropped by the wrapper reshape/slice).
#   wq, wk: (C, 9) depthwise taps    bq, bk, bv: (C, 1)    wv: (C, 9*C) bf16
# ----------------------------------------------------------------------------
def _qkv_conv_kernel(x_ref, wq_ref, bq_ref, wk_ref, bk_ref, wv_ref, bv_ref,
                     q_ref, k_ref, v_ref, *, Wp):
    C, L = q_ref.shape
    f32 = jnp.float32
    wq = wq_ref[...].astype(f32)                       # (C, 9)
    wk = wk_ref[...].astype(f32)
    acc_q = jnp.zeros((C, L), f32)
    acc_k = jnp.zeros((C, L), f32)
    taps = []
    # Each tap is read once and reused for q (depthwise), k (depthwise) and v
    # (dense).  Lane-offset slices on the flat slab are simple lane shifts.
    for dy in range(3):
        for dx in range(3):
            t = dy * 3 + dx
            off = dy * Wp + dx
            tap = x_ref[:, off:off + L].astype(f32)    # (C, L)
            acc_q = acc_q + tap * wq[:, t:t + 1]
            acc_k = acc_k + tap * wk[:, t:t + 1]
            taps.append(tap)
    # Single (C, 9C) x (9C, L) matmul: large L on the MXU/lane side, bf16
    # operands, f32 accumulation.
    tap_cat = jnp.concatenate(taps, axis=0)            # (9C, L) f32
    acc_v = jnp.dot(wv_ref[...], tap_cat.astype(wv_ref.dtype),
                    preferred_element_type=f32)        # (C, L)
    q_ref[...] = (acc_q + bq_ref[...].astype(f32)).astype(q_ref.dtype)
    k_ref[...] = (acc_k + bk_ref[...].astype(f32)).astype(k_ref.dtype)
    v_ref[...] = (acc_v + bv_ref[...].astype(f32)).astype(v_ref.dtype)


def qkv_conv3x3(xpad_flat, wq, bq, wk, bk, wv2, bv, *, H, Wp):
    # TODO(synk): for very large H*W the per-image working set (9*C*H*Wp f32)
    # would need spatial tiling of the flat lane dim; one image per step is
    # fine for typical video-SR frame sizes.
    N, C, flat_len = xpad_flat.shape
    L = H * Wp
    out_sd = jax.ShapeDtypeStruct((N, C, L), xpad_flat.dtype)
    whole = lambda n: (0, 0)
    per_img_in = pl.BlockSpec((None, C, flat_len), lambda n: (n, 0, 0))
    per_img_out = pl.BlockSpec((None, C, L), lambda n: (n, 0, 0))
    return pl.pallas_call(
        partial(_qkv_conv_kernel, Wp=Wp),
        out_shape=(out_sd, out_sd, out_sd),
        grid=(N,),
        in_specs=[
            per_img_in,
            pl.BlockSpec((C, 9), whole),
            pl.BlockSpec((C, 1), whole),
            pl.BlockSpec((C, 9), whole),
            pl.BlockSpec((C, 1), whole),
            pl.BlockSpec((C, 9 * C), whole),
            pl.BlockSpec((C, 1), whole),
        ],
        out_specs=(per_img_out, per_img_out, per_img_out),
        compiler_params=pltpu.CompilerParams(
            dimension_semantics=("parallel",),
            vmem_limit_bytes=_VMEM_LIMIT_BYTES,
        ),
    )(xpad_flat, wq, bq, wk, bk, wv2, bv)


# ----------------------------------------------------------------------------
# Final dense 3x3 conv (padding=1, stride=1) with the residual add fused in.
# The residual at output (y, x) is exactly the centre tap of the padded input
# slab (offset Wp+1), so the original padded input is reused, no extra array.
#   wc: (C, 9*C) bf16    bc: (C, 1)
# ----------------------------------------------------------------------------
def _final_conv_kernel(f_ref, x_ref, wc_ref, bc_ref, o_ref, *, Wp):
    C, L = o_ref.shape
    f32 = jnp.float32
    taps = [f_ref[:, dy * Wp + dx: dy * Wp + dx + L]
            for dy in range(3) for dx in range(3)]
    tap_cat = jnp.concatenate(taps, axis=0).astype(wc_ref.dtype)   # (9C, L)
    acc = jnp.dot(wc_ref[...], tap_cat, preferred_element_type=f32)
    acc = acc + bc_ref[...].astype(f32)
    res = x_ref[:, Wp + 1: Wp + 1 + L].astype(f32)                 # residual x
    o_ref[...] = (acc + res).astype(o_ref.dtype)


def final_conv3x3_residual(feat_pad_flat, xpad_flat, wc2, bc, *, H, Wp):
    N, C, flat_len = feat_pad_flat.shape
    L = H * Wp
    whole = lambda n: (0, 0)
    per_img_in = pl.BlockSpec((None, C, flat_len), lambda n: (n, 0, 0))
    per_img_out = pl.BlockSpec((None, C, L), lambda n: (n, 0, 0))
    return pl.pallas_call(
        partial(_final_conv_kernel, Wp=Wp),
        out_shape=jax.ShapeDtypeStruct((N, C, L), feat_pad_flat.dtype),
        grid=(N,),
        in_specs=[
            per_img_in,
            per_img_in,
            pl.BlockSpec((C, 9 * C), whole),
            pl.BlockSpec((C, 1), whole),
        ],
        out_specs=per_img_out,
        compiler_params=pltpu.CompilerParams(
            dimension_semantics=("parallel",),
            vmem_limit_bytes=_VMEM_LIMIT_BYTES,
        ),
    )(feat_pad_flat, xpad_flat, wc2, bc)


# ----------------------------------------------------------------------------
# Flash-style scaled dot-product attention.
#   Q: (B, H, Lq, d)   K, V: (B, H, Lk, d)   out: (B, H, Lq, d) in Q.dtype
# ----------------------------------------------------------------------------
def _flash_attn_kernel(q_ref, k_ref, v_ref, o_ref, m_sc, l_sc, acc_sc, *, scale):
    kv = pl.program_id(3)

    @pl.when(kv == 0)
    def _():
        m_sc[...] = jnp.full(m_sc.shape, -jnp.inf, m_sc.dtype)
        l_sc[...] = jnp.zeros(l_sc.shape, l_sc.dtype)
        acc_sc[...] = jnp.zeros(acc_sc.shape, acc_sc.dtype)

    # Fold the softmax scale into Q once ((tq,d) muls instead of (tq,tk)) and
    # feed bf16 MXU operands with f32 accumulation.
    q = (q_ref[0, 0] * scale).astype(_MXU_DTYPE)       # (tq, d)
    k = k_ref[0, 0].astype(_MXU_DTYPE)                 # (tk, d)
    v = v_ref[0, 0].astype(_MXU_DTYPE)                 # (tk, d)

    # QK^T without materialising K.T: contract the last dims directly.
    s = lax.dot_general(q, k, (((1,), (1,)), ((), ())),
                        preferred_element_type=jnp.float32)

    m_prev = m_sc[...]
    m_new = jnp.maximum(m_prev, jnp.max(s, axis=-1, keepdims=True))
    alpha = jnp.exp(m_prev - m_new)
    p = jnp.exp(s - m_new)
    l_sc[...] = alpha * l_sc[...] + jnp.sum(p, axis=-1, keepdims=True)
    acc_sc[...] = alpha * acc_sc[...] + jnp.dot(
        p.astype(_MXU_DTYPE), v, preferred_element_type=jnp.float32)
    m_sc[...] = m_new

    @pl.when(kv == pl.num_programs(3) - 1)
    def _():
        inv_l = pl.reciprocal(l_sc[...], approx=False)   # exact normalisation
        o_ref[0, 0] = (acc_sc[...] * inv_l).astype(o_ref.dtype)


def attention(Q, K, V, *, scale):
    B, Hh, Lq, d = Q.shape
    Lk = K.shape[2]
    tq, tk = _attn_tiles(Lq, Lk, d, Q.dtype.itemsize)
    grid = (B, Hh, Lq // tq, Lk // tk)
    return pl.pallas_call(
        partial(_flash_attn_kernel, scale=scale),
        out_shape=jax.ShapeDtypeStruct((B, Hh, Lq, d), Q.dtype),
        grid_spec=pltpu.PrefetchScalarGridSpec(
            num_scalar_prefetch=0,
            grid=grid,
            in_specs=[
                pl.BlockSpec((1, 1, tq, d), lambda b, h, i, j: (b, h, i, 0)),
                pl.BlockSpec((1, 1, tk, d), lambda b, h, i, j: (b, h, j, 0)),
                pl.BlockSpec((1, 1, tk, d), lambda b, h, i, j: (b, h, j, 0)),
            ],
            out_specs=pl.BlockSpec((1, 1, tq, d),
                                   lambda b, h, i, j: (b, h, i, 0)),
            scratch_shapes=[
                pltpu.VMEM((tq, 1), jnp.float32),    # running max m
                pltpu.VMEM((tq, 1), jnp.float32),    # running sum l
                pltpu.VMEM((tq, d), jnp.float32),    # output accumulator
            ],
        ),
        compiler_params=pltpu.CompilerParams(
            dimension_semantics=("parallel", "parallel", "parallel", "arbitrary"),
            vmem_limit_bytes=_VMEM_LIMIT_BYTES,
        ),
    )(Q, K, V)


# ----------------------------------------------------------------------------
# Full forward pass (mirrors globalAttention.forward, stride == patch_size).
# ----------------------------------------------------------------------------
def global_attention_forward(x, params, *, patch_size, heads):
    b, t, c, h, w = x.shape
    p = patch_size
    Hh = heads
    assert h % p == 0 and w % p == 0, "stride==patch_size path needs h,w % p == 0"
    D = p * p * c
    d = D // Hh
    n_q = (h // p) * (w // p)
    N = b * t
    Wp = w + 2
    flat_len = (h + 3) * Wp      # 2 bottom pad rows keep all tap slices in-bounds
    L = h * Wp

    x_nchw = x.reshape(N, c, h, w)
    xpad_flat = jnp.pad(x_nchw, ((0, 0), (0, 0), (1, 2), (1, 1))).reshape(
        N, c, flat_len)

    # Kernel-friendly weight layouts.
    wq_cm = jnp.transpose(params["wq"])                 # (c, 9)
    wk_cm = jnp.transpose(params["wk"])                 # (c, 9)
    bq_c = jnp.transpose(params["bq"])                  # (c, 1)
    bk_c = jnp.transpose(params["bk"])
    bv_c = jnp.transpose(params["bv"])
    bc_c = jnp.transpose(params["bc"])
    # wv2[co, t*c + ci] = wv[t, ci, co]  (matches tap-major row order in-kernel)
    wv2 = jnp.transpose(params["wv"], (2, 0, 1)).reshape(c, 9 * c).astype(_MXU_DTYPE)
    wc2 = jnp.transpose(params["wc"], (2, 0, 1)).reshape(c, 9 * c).astype(_MXU_DTYPE)

    q_f, k_f, v_f = qkv_conv3x3(xpad_flat, wq_cm, bq_c, wk_cm, bk_c, wv2, bv_c,
                                H=h, Wp=Wp)

    def unfold_to_heads(y_flat):
        # F.unfold(kernel=p, stride=p) + the torch view/permute chain -> (b,H,L,d)
        y = y_flat.reshape(N, c, h, Wp)[:, :, :, :w]     # drop padded-width cols
        y = y.reshape(N, c, h // p, p, w // p, p)
        y = jnp.transpose(y, (0, 1, 3, 5, 2, 4))         # (N, c, p, p, h/p, w/p)
        y = y.reshape(b, t, Hh, d, n_q)
        y = jnp.transpose(y, (0, 2, 1, 4, 3))            # (b, H, t, n_q, d)
        return y.reshape(b, Hh, t * n_q, d)

    Q = unfold_to_heads(q_f)
    K = unfold_to_heads(k_f)
    V = unfold_to_heads(v_f)

    attn_x = attention(Q, K, V, scale=float(d) ** -0.5)  # (b, H, L, d)

    # F.fold with stride == kernel (non-overlapping): exact inverse of unfold.
    ax = attn_x.reshape(b, Hh, t, n_q, d)
    ax = jnp.transpose(ax, (0, 2, 1, 4, 3))              # (b, t, H, d, n_q)
    ax = ax.reshape(N, c, p, p, h // p, w // p)
    ax = jnp.transpose(ax, (0, 1, 4, 2, 5, 3))           # (N, c, h/p, p, w/p, p)
    feat = ax.reshape(N, c, h, w)
    feat_pad_flat = jnp.pad(feat, ((0, 0), (0, 0), (1, 2), (1, 1))).reshape(
        N, c, flat_len)

    out_flat = final_conv3x3_residual(feat_pad_flat, xpad_flat, wc2, bc_c,
                                      H=h, Wp=Wp)
    out = out_flat.reshape(N, c, h, Wp)[:, :, :, :w]
    return out.reshape(b, t, c, h, w)


# ----------------------------------------------------------------------------
# Pure-JAX reference (same parameter layout) for a numerical sanity check.
# ----------------------------------------------------------------------------
def global_attention_reference(x, params, *, patch_size, heads):
    b, t, c, h, w = x.shape
    p = patch_size
    Hh = heads
    D = p * p * c
    d = D // Hh
    n_q = (h // p) * (w // p)
    N = b * t

    x2 = x.reshape(N, c, h, w)
    xp = jnp.pad(x2, ((0, 0), (0, 0), (1, 1), (1, 1)))

    def depthwise(inp_pad, w9, bias):
        acc = jnp.zeros((N, c, h, w), jnp.float32)
        for dy in range(3):
            for dx in range(3):
                acc = acc + inp_pad[:, :, dy:dy + h, dx:dx + w] * \
                    w9[dy * 3 + dx][None, :, None, None]
        return acc + bias[0][None, :, None, None]

    def dense(inp_pad, w9, bias):
        co = w9.shape[2]
        acc = jnp.zeros((N, co, h, w), jnp.float32)
        for dy in range(3):
            for dx in range(3):
                acc = acc + jnp.einsum('nihw,io->nohw',
                                       inp_pad[:, :, dy:dy + h, dx:dx + w],
                                       w9[dy * 3 + dx])
        return acc + bias[0][None, :, None, None]

    q = depthwise(xp, params["wq"], params["bq"])
    k = depthwise(xp, params["wk"], params["bk"])
    v = dense(xp, params["wv"], params["bv"])

    def unfold(y):
        y = y.reshape(N, c, h // p, p, w // p, p)
        y = jnp.transpose(y, (0, 1, 3, 5, 2, 4))
        return y.reshape(N, c * p * p, n_q)

    def to_bhdl(u):
        u = u.reshape(b, t, Hh, d, n_q)
        u = jnp.transpose(u, (0, 2, 3, 1, 4))
        return u.reshape(b, Hh, d, t * n_q)

    uq, uk, uv = to_bhdl(unfold(q)), to_bhdl(unfold(k)), to_bhdl(unfold(v))
    attn = jnp.einsum('bhdl,bhdm->bhlm', uq, uk) * (float(d) ** -0.5)
    attn = jax.nn.softmax(attn, axis=-1)
    ax = jnp.einsum('bhlm,bhdm->bhld', attn, uv)
    ax = ax.reshape(b, Hh, t, n_q, d)
    ax = jnp.transpose(ax, (0, 2, 1, 4, 3)).reshape(N, D, n_q)
    f = ax.reshape(N, c, p, p, h // p, w // p)
    f = jnp.transpose(f, (0, 1, 4, 2, 5, 3)).reshape(N, c, h, w)
    fp = jnp.pad(f, ((0, 0), (0, 0), (1, 1), (1, 1)))
    out = dense(fp, params["wc"], params["bc"]).reshape(b, t, c, h, w)
    return out + x


# ----------------------------------------------------------------------------
if __name__ == "__main__":
    # Small shapes consistent with the module: num_feat=8, patch_size=4,
    # stride_q=stride_kv=4, heads=1 -> d = 4*4*8 = 128 (lane aligned), L = 32.
    b, t, c, h, w = 2, 2, 8, 16, 16
    patch_size, heads = 4, 1

    key = jax.random.PRNGKey(0)
    ks = jax.random.split(key, 9)
    x = jax.random.normal(ks[0], (b, t, c, h, w), jnp.float32)

    # Parameter layout: depthwise (9, C) [tap-major]; dense (9, Cin, Cout)
    # (maps from torch (Co,Ci,3,3) via w9[ky*3+kx, ci, co] = W[co, ci, ky, kx]).
    params = {
        "wq": jax.random.normal(ks[1], (9, c), jnp.float32) * 0.05,
        "bq": jax.random.normal(ks[2], (1, c), jnp.float32) * 0.01,
        "wk": jax.random.normal(ks[3], (9, c), jnp.float32) * 0.05,
        "bk": jax.random.normal(ks[4], (1, c), jnp.float32) * 0.01,
        "wv": jax.random.normal(ks[5], (9, c, c), jnp.float32) * 0.05,
        "bv": jax.random.normal(ks[6], (1, c), jnp.float32) * 0.01,
        "wc": jax.random.normal(ks[7], (9, c, c), jnp.float32) * 0.05,
        "bc": jax.random.normal(ks[8], (1, c), jnp.float32) * 0.01,
    }

    fwd = jax.jit(partial(global_attention_forward,
                          patch_size=patch_size, heads=heads))
    out = fwd(x, params)
    jax.block_until_ready(out)
    assert out.shape == x.shape and out.dtype == x.dtype

    ref = jax.jit(partial(global_attention_reference,
                          patch_size=patch_size, heads=heads))(x, params)
    np.testing.assert_allclose(np.asarray(out), np.asarray(ref),
                               rtol=2e-2, atol=2e-2)
    print("KERNEL_OK")
</pallas_src>

<mosaic_0001>
module attributes {stable_mosaic.version = 11 : i64} {
  func.func @_qkv_conv_kernel(%arg0: i32, %arg1: memref<1x8x342xf32, #tpu.memory_space<vmem>>, %arg2: memref<8x9xf32, #tpu.memory_space<vmem>>, %arg3: memref<8x1xf32, #tpu.memory_space<vmem>>, %arg4: memref<8x9xf32, #tpu.memory_space<vmem>>, %arg5: memref<8x1xf32, #tpu.memory_space<vmem>>, %arg6: memref<8x72xbf16, #tpu.memory_space<vmem>>, %arg7: memref<8x1xf32, #tpu.memory_space<vmem>>, %arg8: memref<1x8x288xf32, #tpu.memory_space<vmem>>, %arg9: memref<1x8x288xf32, #tpu.memory_space<vmem>>, %arg10: memref<1x8x288xf32, #tpu.memory_space<vmem>>) attributes {dimension_semantics = [#tpu.dimension_semantics<parallel>], iteration_bounds = array<i64: 4>, scalar_prefetch = 0 : i64, scratch_operands = 0 : i64, tpu.core_type = #tpu.core_type<tc>, window_params = [{transform_indices = @transform_0, window_bounds = array<i64: 1, 8, 342>}, {pipeline_mode = #tpu.pipeline_mode<synchronous>, transform_indices = @transform_1, window_bounds = array<i64: 8, 9>}, {pipeline_mode = #tpu.pipeline_mode<synchronous>, transform_indices = @transform_2, window_bounds = array<i64: 8, 1>}, {pipeline_mode = #tpu.pipeline_mode<synchronous>, transform_indices = @transform_3, window_bounds = array<i64: 8, 9>}, {pipeline_mode = #tpu.pipeline_mode<synchronous>, transform_indices = @transform_4, window_bounds = array<i64: 8, 1>}, {pipeline_mode = #tpu.pipeline_mode<synchronous>, transform_indices = @transform_5, window_bounds = array<i64: 8, 72>}, {pipeline_mode = #tpu.pipeline_mode<synchronous>, transform_indices = @transform_6, window_bounds = array<i64: 8, 1>}, {transform_indices = @transform_7, window_bounds = array<i64: 1, 8, 288>}, {transform_indices = @transform_8, window_bounds = array<i64: 1, 8, 288>}, {transform_indices = @transform_9, window_bounds = array<i64: 1, 8, 288>}]} {
    %c0 = arith.constant 0 : index
    %c0_0 = arith.constant 0 : index
    %0 = vector.load %arg2[%c0, %c0_0] : memref<8x9xf32, #tpu.memory_space<vmem>>, vector<8x9xf32>
    %c0_1 = arith.constant 0 : index
    %c0_2 = arith.constant 0 : index
    %1 = vector.load %arg4[%c0_1, %c0_2] : memref<8x9xf32, #tpu.memory_space<vmem>>, vector<8x9xf32>
    %cst = arith.constant 0.000000e+00 : f32
    %2 = vector.broadcast %cst : f32 to vector<8x288xf32>
    %cst_3 = arith.constant 0.000000e+00 : f32
    %3 = vector.broadcast %cst_3 : f32 to vector<8x288xf32>
    %c0_4 = arith.constant 0 : index
    %c0_5 = arith.constant 0 : index
    %c0_6 = arith.constant 0 : index
    %4 = vector.load %arg1[%c0_4, %c0_5, %c0_6] : memref<1x8x342xf32, #tpu.memory_space<vmem>>, vector<1x8x288xf32>
    %5 = vector.shape_cast %4 : vector<1x8x288xf32> to vector<8x288xf32>
    %6 = vector.extract_strided_slice %0 {offsets = [0, 0], sizes = [8, 1], strides = [1, 1]} : vector<8x9xf32> to vector<8x1xf32>
    %7 = vector.broadcast %6 : vector<8x1xf32> to vector<8x288xf32>
    %8 = arith.mulf %5, %7 : vector<8x288xf32>
    %9 = arith.addf %2, %8 : vector<8x288xf32>
    %10 = vector.extract_strided_slice %1 {offsets = [0, 0], sizes = [8, 1], strides = [1, 1]} : vector<8x9xf32> to vector<8x1xf32>
    %11 = vector.broadcast %10 : vector<8x1xf32> to vector<8x288xf32>
    %12 = arith.mulf %5, %11 : vector<8x288xf32>
    %13 = arith.addf %3, %12 : vector<8x288xf32>
    %c0_7 = arith.constant 0 : index
    %c0_8 = arith.constant 0 : index
    %c1 = arith.constant 1 : index
    %14 = vector.load %arg1[%c0_7, %c0_8, %c1] : memref<1x8x342xf32, #tpu.memory_space<vmem>>, vector<1x8x288xf32>
    %15 = vector.shape_cast %14 : vector<1x8x288xf32> to vector<8x288xf32>
    %16 = vector.extract_strided_slice %0 {offsets = [0, 1], sizes = [8, 1], strides = [1, 1]} : vector<8x9xf32> to vector<8x1xf32>
    %17 = vector.broadcast %16 : vector<8x1xf32> to vector<8x288xf32>
    %18 = arith.mulf %15, %17 : vector<8x288xf32>
    %19 = arith.addf %9, %18 : vector<8x288xf32>
    %20 = vector.extract_strided_slice %1 {offsets = [0, 1], sizes = [8, 1], strides = [1, 1]} : vector<8x9xf32> to vector<8x1xf32>
    %21 = vector.broadcast %20 : vector<8x1xf32> to vector<8x288xf32>
    %22 = arith.mulf %15, %21 : vector<8x288xf32>
    %23 = arith.addf %13, %22 : vector<8x288xf32>
    %c0_9 = arith.constant 0 : index
    %c0_10 = arith.constant 0 : index
    %c2 = arith.constant 2 : index
    %24 = vector.load %arg1[%c0_9, %c0_10, %c2] : memref<1x8x342xf32, #tpu.memory_space<vmem>>, vector<1x8x288xf32>
    %25 = vector.shape_cast %24 : vector<1x8x288xf32> to vector<8x288xf32>
    %26 = vector.extract_strided_slice %0 {offsets = [0, 2], sizes = [8, 1], strides = [1, 1]} : vector<8x9xf32> to vector<8x1xf32>
    %27 = vector.broadcast %26 : vector<8x1xf32> to vector<8x288xf32>
    %28 = arith.mulf %25, %27 : vector<8x288xf32>
    %29 = arith.addf %19, %28 : vector<8x288xf32>
    %30 = vector.extract_strided_slice %1 {offsets = [0, 2], sizes = [8, 1], strides = [1, 1]} : vector<8x9xf32> to vector<8x1xf32>
    %31 = vector.broadcast %30 : vector<8x1xf32> to vector<8x288xf32>
    %32 = arith.mulf %25, %31 : vector<8x288xf32>
    %33 = arith.addf %23, %32 : vector<8x288xf32>
    %c0_11 = arith.constant 0 : index
    %c0_12 = arith.constant 0 : index
    %c18 = arith.constant 18 : index
    %34 = vector.load %arg1[%c0_11, %c0_12, %c18] : memref<1x8x342xf32, #tpu.memory_space<vmem>>, vector<1x8x288xf32>
    %35 = vector.shape_cast %34 : vector<1x8x288xf32> to vector<8x288xf32>
    %36 = vector.extract_strided_slice %0 {offsets = [0, 3], sizes = [8, 1], strides = [1, 1]} : vector<8x9xf32> to vector<8x1xf32>
    %37 = vector.broadcast %36 : vector<8x1xf32> to vector<8x288xf32>
    %38 = arith.mulf %35, %37 : vector<8x288xf32>
    %39 = arith.addf %29, %38 : vector<8x288xf32>
    %40 = vector.extract_strided_slice %1 {offsets = [0, 3], sizes = [8, 1], strides = [1, 1]} : vector<8x9xf32> to vector<8x1xf32>
    %41 = vector.broadcast %40 : vector<8x1xf32> to vector<8x288xf32>
    %42 = arith.mulf %35, %41 : vector<8x288xf32>
    %43 = arith.addf %33, %42 : vector<8x288xf32>
    %c0_13 = arith.constant 0 : index
    %c0_14 = arith.constant 0 : index
    %c19 = arith.constant 19 : index
    %44 = vector.load %arg1[%c0_13, %c0_14, %c19] : memref<1x8x342xf32, #tpu.memory_space<vmem>>, vector<1x8x288xf32>
    %45 = vector.shape_cast %44 : vector<1x8x288xf32> to vector<8x288xf32>
    %46 = vector.extract_strided_slice %0 {offsets = [0, 4], sizes = [8, 1], strides = [1, 1]} : vector<8x9xf32> to vector<8x1xf32>
    %47 = vector.broadcast %46 : vector<8x1xf32> to vector<8x288xf32>
    %48 = arith.mulf %45, %47 : vector<8x288xf32>
    %49 = arith.addf %39, %48 : vector<8x288xf32>
    %50 = vector.extract_strided_slice %1 {offsets = [0, 4], sizes = [8, 1], strides = [1, 1]} : vector<8x9xf32> to vector<8x1xf32>
    %51 = vector.broadcast %50 : vector<8x1xf32> to vector<8x288xf32>
    %52 = arith.mulf %45, %51 : vector<8x288xf32>
    %53 = arith.addf %43, %52 : vector<8x288xf32>
    %c0_15 = arith.constant 0 : index
    %c0_16 = arith.constant 0 : index
    %c20 = arith.constant 20 : index
    %54 = vector.load %arg1[%c0_15, %c0_16, %c20] : memref<1x8x342xf32, #tpu.memory_space<vmem>>, vector<1x8x288xf32>
    %55 = vector.shape_cast %54 : vector<1x8x288xf32> to vector<8x288xf32>
    %56 = vector.extract_strided_slice %0 {offsets = [0, 5], sizes = [8, 1], strides = [1, 1]} : vector<8x9xf32> to vector<8x1xf32>
    %57 = vector.broadcast %56 : vector<8x1xf32> to vector<8x288xf32>
    %58 = arith.mulf %55, %57 : vector<8x288xf32>
    %59 = arith.addf %49, %58 : vector<8x288xf32>
    %60 = vector.extract_strided_slice %1 {offsets = [0, 5], sizes = [8, 1], strides = [1, 1]} : vector<8x9xf32> to vector<8x1xf32>
    %61 = vector.broadcast %60 : vector<8x1xf32> to vector<8x288xf32>
    %62 = arith.mulf %55, %61 : vector<8x288xf32>
    %63 = arith.addf %53, %62 : vector<8x288xf32>
    %c0_17 = arith.constant 0 : index
    %c0_18 = arith.constant 0 : index
    %c36 = arith.constant 36 : index
    %64 = vector.load %arg1[%c0_17, %c0_18, %c36] : memref<1x8x342xf32, #tpu.memory_space<vmem>>, vector<1x8x288xf32>
    %65 = vector.shape_cast %64 : vector<1x8x288xf32> to vector<8x288xf32>
    %66 = vector.extract_strided_slice %0 {offsets = [0, 6], sizes = [8, 1], strides = [1, 1]} : vector<8x9xf32> to vector<8x1xf32>
    %67 = vector.broadcast %66 : vector<8x1xf32> to vector<8x288xf32>
    %68 = arith.mulf %65, %67 : vector<8x288xf32>
    %69 = arith.addf %59, %68 : vector<8x288xf32>
    %70 = vector.extract_strided_slice %1 {offsets = [0, 6], sizes = [8, 1], strides = [1, 1]} : vector<8x9xf32> to vector<8x1xf32>
    %71 = vector.broadcast %70 : vector<8x1xf32> to vector<8x288xf32>
    %72 = arith.mulf %65, %71 : vector<8x288xf32>
    %73 = arith.addf %63, %72 : vector<8x288xf32>
    %c0_19 = arith.constant 0 : index
    %c0_20 = arith.constant 0 : index
    %c37 = arith.constant 37 : index
    %74 = vector.load %arg1[%c0_19, %c0_20, %c37] : memref<1x8x342xf32, #tpu.memory_space<vmem>>, vector<1x8x288xf32>
    %75 = vector.shape_cast %74 : vector<1x8x288xf32> to vector<8x288xf32>
    %76 = vector.extract_strided_slice %0 {offsets = [0, 7], sizes = [8, 1], strides = [1, 1]} : vector<8x9xf32> to vector<8x1xf32>
    %77 = vector.broadcast %76 : vector<8x1xf32> to vector<8x288xf32>
    %78 = arith.mulf %75, %77 : vector<8x288xf32>
    %79 = arith.addf %69, %78 : vector<8x288xf32>
    %80 = vector.extract_strided_slice %1 {offsets = [0, 7], sizes = [8, 1], strides = [1, 1]} : vector<8x9xf32> to vector<8x1xf32>
    %81 = vector.broadcast %80 : vector<8x1xf32> to vector<8x288xf32>
    %82 = arith.mulf %75, %81 : vector<8x288xf32>
    %83 = arith.addf %73, %82 : vector<8x288xf32>
    %c0_21 = arith.constant 0 : index
    %c0_22 = arith.constant 0 : index
    %c38 = arith.constant 38 : index
    %84 = vector.load %arg1[%c0_21, %c0_22, %c38] : memref<1x8x342xf32, #tpu.memory_space<vmem>>, vector<1x8x288xf32>
    %85 = vector.shape_cast %84 : vector<1x8x288xf32> to vector<8x288xf32>
    %86 = vector.extract_strided_slice %0 {offsets = [0, 8], sizes = [8, 1], strides = [1, 1]} : vector<8x9xf32> to vector<8x1xf32>
    %87 = vector.broadcast %86 : vector<8x1xf32> to vector<8x288xf32>
    %88 = arith.mulf %85, %87 : vector<8x288xf32>
    %89 = arith.addf %79, %88 : vector<8x288xf32>
    %90 = vector.extract_strided_slice %1 {offsets = [0, 8], sizes = [8, 1], strides = [1, 1]} : vector<8x9xf32> to vector<8x1xf32>
    %91 = vector.broadcast %90 : vector<8x1xf32> to vector<8x288xf32>
    %92 = arith.mulf %85, %91 : vector<8x288xf32>
    %93 = arith.addf %83, %92 : vector<8x288xf32>
    %94 = tpu.concatenate %5, %15, %25, %35, %45, %55, %65, %75, %85 in 0 : vector<8x288xf32>, vector<8x288xf32>, vector<8x288xf32>, vector<8x288xf32>, vector<8x288xf32>, vector<8x288xf32>, vector<8x288xf32>, vector<8x288xf32>, vector<8x288xf32> -> vector<72x288xf32>
    %c0_23 = arith.constant 0 : index
    %c0_24 = arith.constant 0 : index
    %95 = vector.load %arg6[%c0_23, %c0_24] : memref<8x72xbf16, #tpu.memory_space<vmem>>, vector<8x72xbf16>
    %96 = arith.truncf %94 : vector<72x288xf32> to vector<72x288xbf16>
    %cst_25 = arith.constant dense<0.000000e+00> : vector<8x288xf32>
    %97 = tpu.matmul %95, %96, %cst_25 {dimension_numbers = #tpu.dot_dimension_numbers<[1], [0], [0], [1], [0, 0, 1, 1], [], []>} : vector<8x72xbf16>, vector<72x288xbf16>, vector<8x288xf32> -> vector<8x288xf32>
    %c0_26 = arith.constant 0 : index
    %c0_27 = arith.constant 0 : index
    %98 = vector.load %arg3[%c0_26, %c0_27] : memref<8x1xf32, #tpu.memory_space<vmem>>, vector<8x1xf32>
    %99 = vector.broadcast %98 : vector<8x1xf32> to vector<8x288xf32>
    %100 = arith.addf %89, %99 : vector<8x288xf32>
    %c0_28 = arith.constant 0 : index
    %c0_29 = arith.constant 0 : index
    %c0_30 = arith.constant 0 : index
    %101 = vector.load %arg8[%c0_28, %c0_29, %c0_30] : memref<1x8x288xf32, #tpu.memory_space<vmem>>, vector<1x8x288xf32>
    %102 = vector.shape_cast %101 : vector<1x8x288xf32> to vector<8x288xf32>
    %103 = vector.shape_cast %100 : vector<8x288xf32> to vector<1x8x288xf32>
    tpu.vector_store %arg8[%c0_28, %c0_29, %c0_30], %103 {strides = array<i32>} : memref<1x8x288xf32, #tpu.memory_space<vmem>>, vector<1x8x288xf32>,
    %c0_31 = arith.constant 0 : index
    %c0_32 = arith.constant 0 : index
    %104 = vector.load %arg5[%c0_31, %c0_32] : memref<8x1xf32, #tpu.memory_space<vmem>>, vector<8x1xf32>
    %105 = vector.broadcast %104 : vector<8x1xf32> to vector<8x288xf32>
    %106 = arith.addf %93, %105 : vector<8x288xf32>
    %c0_33 = arith.constant 0 : index
    %c0_34 = arith.constant 0 : index
    %c0_35 = arith.constant 0 : index
    %107 = vector.load %arg9[%c0_33, %c0_34, %c0_35] : memref<1x8x288xf32, #tpu.memory_space<vmem>>, vector<1x8x288xf32>
    %108 = vector.shape_cast %107 : vector<1x8x288xf32> to vector<8x288xf32>
    %109 = vector.shape_cast %106 : vector<8x288xf32> to vector<1x8x288xf32>
    tpu.vector_store %arg9[%c0_33, %c0_34, %c0_35], %109 {strides = array<i32>} : memref<1x8x288xf32, #tpu.memory_space<vmem>>, vector<1x8x288xf32>,
    %c0_36 = arith.constant 0 : index
    %c0_37 = arith.constant 0 : index
    %110 = vector.load %arg7[%c0_36, %c0_37] : memref<8x1xf32, #tpu.memory_space<vmem>>, vector<8x1xf32>
    %111 = vector.broadcast %110 : vector<8x1xf32> to vector<8x288xf32>
    %112 = arith.addf %97, %111 : vector<8x288xf32>
    %c0_38 = arith.constant 0 : index
    %c0_39 = arith.constant 0 : index
    %c0_40 = arith.constant 0 : index
    %113 = vector.load %arg10[%c0_38, %c0_39, %c0_40] : memref<1x8x288xf32, #tpu.memory_space<vmem>>, vector<1x8x288xf32>
    %114 = vector.shape_cast %113 : vector<1x8x288xf32> to vector<8x288xf32>
    %115 = vector.shape_cast %112 : vector<8x288xf32> to vector<1x8x288xf32>
    tpu.vector_store %arg10[%c0_38, %c0_39, %c0_40], %115 {strides = array<i32>} : memref<1x8x288xf32, #tpu.memory_space<vmem>>, vector<1x8x288xf32>,
    return
  }
  func.func @transform_0(%arg0: i32) -> (i32, i32, i32) {
    %c0_i32 = arith.constant 0 : i32
    %c0_i32_0 = arith.constant 0 : i32
    %c0_i32_1 = arith.constant 0 : i32
    return %arg0, %c0_i32, %c0_i32_0 : i32, i32, i32
  }
  func.func @transform_1(%arg0: i32) -> (i32, i32) {
    %c0_i32 = arith.constant 0 : i32
    %c0_i32_0 = arith.constant 0 : i32
    %c0_i32_1 = arith.constant 0 : i32
    return %c0_i32, %c0_i32_0 : i32, i32
  }
  func.func @transform_2(%arg0: i32) -> (i32, i32) {
    %c0_i32 = arith.constant 0 : i32
    %c0_i32_0 = arith.constant 0 : i32
    %c0_i32_1 = arith.constant 0 : i32
    return %c0_i32, %c0_i32_0 : i32, i32
  }
  func.func @transform_3(%arg0: i32) -> (i32, i32) {
    %c0_i32 = arith.constant 0 : i32
    %c0_i32_0 = arith.constant 0 : i32
    %c0_i32_1 = arith.constant 0 : i32
    return %c0_i32, %c0_i32_0 : i32, i32
  }
  func.func @transform_4(%arg0: i32) -> (i32, i32) {
    %c0_i32 = arith.constant 0 : i32
    %c0_i32_0 = arith.constant 0 : i32
    %c0_i32_1 = arith.constant 0 : i32
    return %c0_i32, %c0_i32_0 : i32, i32
  }
  func.func @transform_5(%arg0: i32) -> (i32, i32) {
    %c0_i32 = arith.constant 0 : i32
    %c0_i32_0 = arith.constant 0 : i32
    %c0_i32_1 = arith.constant 0 : i32
    return %c0_i32, %c0_i32_0 : i32, i32
  }
  func.func @transform_6(%arg0: i32) -> (i32, i32) {
    %c0_i32 = arith.constant 0 : i32
    %c0_i32_0 = arith.constant 0 : i32
    %c0_i32_1 = arith.constant 0 : i32
    return %c0_i32, %c0_i32_0 : i32, i32
  }
  func.func @transform_7(%arg0: i32) -> (i32, i32, i32) {
    %c0_i32 = arith.constant 0 : i32
    %c0_i32_0 = arith.constant 0 : i32
    %c0_i32_1 = arith.constant 0 : i32
    return %arg0, %c0_i32, %c0_i32_0 : i32, i32, i32
  }
  func.func @transform_8(%arg0: i32) -> (i32, i32, i32) {
    %c0_i32 = arith.constant 0 : i32
    %c0_i32_0 = arith.constant 0 : i32
    %c0_i32_1 = arith.constant 0 : i32
    return %arg0, %c0_i32, %c0_i32_0 : i32, i32, i32
  }
  func.func @transform_9(%arg0: i32) -> (i32, i32, i32) {
    %c0_i32 = arith.constant 0 : i32
    %c0_i32_0 = arith.constant 0 : i32
    %c0_i32_1 = arith.constant 0 : i32
    return %arg0, %c0_i32, %c0_i32_0 : i32, i32, i32
  }
}

module attributes {stable_mosaic.version = 11 : i64} {
  func.func @_flash_attn_kernel(%arg0: i32, %arg1: i32, %arg2: i32, %arg3: i32, %arg4: memref<1x1x32x128xf32, #tpu.memory_space<vmem>>, %arg5: memref<1x1x32x128xf32, #tpu.memory_space<vmem>>, %arg6: memref<1x1x32x128xf32, #tpu.memory_space<vmem>>, %arg7: memref<1x1x32x128xf32, #tpu.memory_space<vmem>>, %arg8: memref<32x1xf32, #tpu.memory_space<vmem>>, %arg9: memref<32x1xf32, #tpu.memory_space<vmem>>, %arg10: memref<32x128xf32, #tpu.memory_space<vmem>>) attributes {dimension_semantics = [#tpu.dimension_semantics<parallel>, #tpu.dimension_semantics<parallel>, #tpu.dimension_semantics<parallel>, #tpu.dimension_semantics<arbitrary>], iteration_bounds = array<i64: 2, 1, 1, 1>, scalar_prefetch = 0 : i64, scratch_operands = 3 : i64, tpu.core_type = #tpu.core_type<tc>, window_params = [{transform_indices = @transform_0, window_bounds = array<i64: 1, 1, 32, 128>}, {transform_indices = @transform_1, window_bounds = array<i64: 1, 1, 32, 128>}, {transform_indices = @transform_2, window_bounds = array<i64: 1, 1, 32, 128>}, {transform_indices = @transform_3, window_bounds = array<i64: 1, 1, 32, 128>}]} {
    %c0_i32 = arith.constant 0 : i32
    %0 = arith.cmpi eq, %arg3, %c0_i32 : i32
    %1 = arith.extui %0 : i1 to i32
    %c0_i32_0 = arith.constant 0 : i32
    %2 = arith.cmpi ne, %1, %c0_i32_0 : i32
    scf.if %2 {
      %cst_30 = arith.constant 0xFF800000 : f32
      %41 = vector.broadcast %cst_30 : f32 to vector<32x1xf32>
      %c0_31 = arith.constant 0 : index
      %c0_32 = arith.constant 0 : index
      %42 = vector.load %arg8[%c0_31, %c0_32] : memref<32x1xf32, #tpu.memory_space<vmem>>, vector<32x1xf32>
      tpu.vector_store %arg8[%c0_31, %c0_32], %41 {strides = array<i32>} : memref<32x1xf32, #tpu.memory_space<vmem>>, vector<32x1xf32>,
      %cst_33 = arith.constant 0.000000e+00 : f32
      %43 = vector.broadcast %cst_33 : f32 to vector<32x1xf32>
      %c0_34 = arith.constant 0 : index
      %c0_35 = arith.constant 0 : index
      %44 = vector.load %arg9[%c0_34, %c0_35] : memref<32x1xf32, #tpu.memory_space<vmem>>, vector<32x1xf32>
      tpu.vector_store %arg9[%c0_34, %c0_35], %43 {strides = array<i32>} : memref<32x1xf32, #tpu.memory_space<vmem>>, vector<32x1xf32>,
      %cst_36 = arith.constant 0.000000e+00 : f32
      %45 = vector.broadcast %cst_36 : f32 to vector<32x128xf32>
      %c0_37 = arith.constant 0 : index
      %c0_38 = arith.constant 0 : index
      %46 = vector.load %arg10[%c0_37, %c0_38] : memref<32x128xf32, #tpu.memory_space<vmem>>, vector<32x128xf32>
      tpu.vector_store %arg10[%c0_37, %c0_38], %45 {strides = array<i32>} : memref<32x128xf32, #tpu.memory_space<vmem>>, vector<32x128xf32>,
    } else {
    }
    %c0 = arith.constant 0 : index
    %c0_1 = arith.constant 0 : index
    %c0_2 = arith.constant 0 : index
    %c0_3 = arith.constant 0 : index
    %3 = vector.load %arg4[%c0, %c0_1, %c0_2, %c0_3] : memref<1x1x32x128xf32, #tpu.memory_space<vmem>>, vector<1x1x32x128xf32>
    %4 = vector.shape_cast %3 : vector<1x1x32x128xf32> to vector<32x128xf32>
    %cst = arith.constant 0.0883883461 : f32
    %5 = vector.broadcast %cst : f32 to vector<32x128xf32>
    %6 = arith.mulf %4, %5 : vector<32x128xf32>
    %7 = arith.truncf %6 : vector<32x128xf32> to vector<32x128xbf16>
    %c0_4 = arith.constant 0 : index
    %c0_5 = arith.constant 0 : index
    %c0_6 = arith.constant 0 : index
    %c0_7 = arith.constant 0 : index
    %8 = vector.load %arg5[%c0_4, %c0_5, %c0_6, %c0_7] : memref<1x1x32x128xf32, #tpu.memory_space<vmem>>, vector<1x1x32x128xf32>
    %9 = vector.shape_cast %8 : vector<1x1x32x128xf32> to vector<32x128xf32>
    %10 = arith.truncf %9 : vector<32x128xf32> to vector<32x128xbf16>
    %c0_8 = arith.constant 0 : index
    %c0_9 = arith.constant 0 : index
    %c0_10 = arith.constant 0 : index
    %c0_11 = arith.constant 0 : index
    %11 = vector.load %arg6[%c0_8, %c0_9, %c0_10, %c0_11] : memref<1x1x32x128xf32, #tpu.memory_space<vmem>>, vector<1x1x32x128xf32>
    %12 = vector.shape_cast %11 : vector<1x1x32x128xf32> to vector<32x128xf32>
    %13 = arith.truncf %12 : vector<32x128xf32> to vector<32x128xbf16>
    %cst_12 = arith.constant dense<0.000000e+00> : vector<32x32xf32>
    %14 = tpu.matmul %7, %10, %cst_12 {dimension_numbers = #tpu.dot_dimension_numbers<[1], [1], [0], [0], [0, 0, 1, 0], [], []>} : vector<32x128xbf16>, vector<32x128xbf16>, vector<32x32xf32> -> vector<32x32xf32>
    %c0_13 = arith.constant 0 : index
    %c0_14 = arith.constant 0 : index
    %15 = vector.load %arg8[%c0_13, %c0_14] : memref<32x1xf32, #tpu.memory_space<vmem>>, vector<32x1xf32>
    %cst_15 = arith.constant dense<0xFF800000> : vector<32xf32>
    %16 = vector.multi_reduction <maximumf>, %14, %cst_15 [1] : vector<32x32xf32> to vector<32xf32>
    %17 = vector.shape_cast %16 : vector<32xf32> to vector<32x1xf32>
    %18 = arith.maximumf %15, %17 : vector<32x1xf32>
    %19 = arith.subf %15, %18 : vector<32x1xf32>
    %20 = math.exp %19 : vector<32x1xf32>
    %21 = vector.broadcast %18 : vector<32x1xf32> to vector<32x32xf32>
    %22 = arith.subf %14, %21 : vector<32x32xf32>
    %23 = math.exp %22 : vector<32x32xf32>
    %c0_16 = arith.constant 0 : index
    %c0_17 = arith.constant 0 : index
    %24 = vector.load %arg9[%c0_16, %c0_17] : memref<32x1xf32, #tpu.memory_space<vmem>>, vector<32x1xf32>
    %25 = arith.mulf %20, %24 : vector<32x1xf32>
    %cst_18 = arith.constant dense<0.000000e+00> : vector<32xf32>
    %26 = vector.multi_reduction <add>, %23, %cst_18 [1] : vector<32x32xf32> to vector<32xf32>
    %27 = vector.shape_cast %26 : vector<32xf32> to vector<32x1xf32>
    %28 = arith.addf %25, %27 : vector<32x1xf32>
    %c0_19 = arith.constant 0 : index
    %c0_20 = arith.constant 0 : index
    %29 = vector.load %arg9[%c0_19, %c0_20] : memref<32x1xf32, #tpu.memory_space<vmem>>, vector<32x1xf32>
    tpu.vector_store %arg9[%c0_19, %c0_20], %28 {strides = array<i32>} : memref<32x1xf32, #tpu.memory_space<vmem>>, vector<32x1xf32>,
    %c0_21 = arith.constant 0 : index
    %c0_22 = arith.constant 0 : index
    %30 = vector.load %arg10[%c0_21, %c0_22] : memref<32x128xf32, #tpu.memory_space<vmem>>, vector<32x128xf32>
    %31 = vector.broadcast %20 : vector<32x1xf32> to vector<32x128xf32>
    %32 = arith.mulf %31, %30 : vector<32x128xf32>
    %33 = arith.truncf %23 : vector<32x32xf32> to vector<32x32xbf16>
    %cst_23 = arith.constant dense<0.000000e+00> : vector<32x128xf32>
    %34 = tpu.matmul %33, %13, %cst_23 {dimension_numbers = #tpu.dot_dimension_numbers<[1], [0], [0], [1], [0, 0, 1, 1], [], []>} : vector<32x32xbf16>, vector<32x128xbf16>, vector<32x128xf32> -> vector<32x128xf32>
    %35 = arith.addf %32, %34 : vector<32x128xf32>
    %c0_24 = arith.constant 0 : index
    %c0_25 = arith.constant 0 : index
    %36 = vector.load %arg10[%c0_24, %c0_25] : memref<32x128xf32, #tpu.memory_space<vmem>>, vector<32x128xf32>
    tpu.vector_store %arg10[%c0_24, %c0_25], %35 {strides = array<i32>} : memref<32x128xf32, #tpu.memory_space<vmem>>, vector<32x128xf32>,
    %c0_26 = arith.constant 0 : index
    %c0_27 = arith.constant 0 : index
    %37 = vector.load %arg8[%c0_26, %c0_27] : memref<32x1xf32, #tpu.memory_space<vmem>>, vector<32x1xf32>
    tpu.vector_store %arg8[%c0_26, %c0_27], %18 {strides = array<i32>} : memref<32x1xf32, #tpu.memory_space<vmem>>, vector<32x1xf32>,
    %c0_i32_28 = arith.constant 0 : i32
    %38 = arith.cmpi eq, %arg3, %c0_i32_28 : i32
    %39 = arith.extui %38 : i1 to i32
    %c0_i32_29 = arith.constant 0 : i32
    %40 = arith.cmpi ne, %39, %c0_i32_29 : i32
    scf.if %40 {
      %c0_30 = arith.constant 0 : index
      %c0_31 = arith.constant 0 : index
      %41 = vector.load %arg9[%c0_30, %c0_31] : memref<32x1xf32, #tpu.memory_space<vmem>>, vector<32x1xf32>
      %42 = tpu.reciprocal %41 : vector<32x1xf32> -> vector<32x1xf32>
      %c0_32 = arith.constant 0 : index
      %c0_33 = arith.constant 0 : index
      %43 = vector.load %arg10[%c0_32, %c0_33] : memref<32x128xf32, #tpu.memory_space<vmem>>, vector<32x128xf32>
      %44 = vector.broadcast %42 : vector<32x1xf32> to vector<32x128xf32>
      %45 = arith.mulf %43, %44 : vector<32x128xf32>
      %c0_34 = arith.constant 0 : index
      %c0_35 = arith.constant 0 : index
      %c0_36 = arith.constant 0 : index
      %c0_37 = arith.constant 0 : index
      %46 = vector.load %arg7[%c0_34, %c0_35, %c0_36, %c0_37] : memref<1x1x32x128xf32, #tpu.memory_space<vmem>>, vector<1x1x32x128xf32>
      %47 = vector.shape_cast %46 : vector<1x1x32x128xf32> to vector<32x128xf32>
      %48 = vector.shape_cast %45 : vector<32x128xf32> to vector<1x1x32x128xf32>
      tpu.vector_store %arg7[%c0_34, %c0_35, %c0_36, %c0_37], %48 {strides = array<i32>} : memref<1x1x32x128xf32, #tpu.memory_space<vmem>>, vector<1x1x32x128xf32>,
    } else {
    }
    return
  }
  func.func @transform_0(%arg0: i32, %arg1: i32, %arg2: i32, %arg3: i32) -> (i32, i32, i32, i32) {
    %c0_i32 = arith.constant 0 : i32
    %c0_i32_0 = arith.constant 0 : i32
    return %arg0, %arg1, %arg2, %c0_i32 : i32, i32, i32, i32
  }
  func.func @transform_1(%arg0: i32, %arg1: i32, %arg2: i32, %arg3: i32) -> (i32, i32, i32, i32) {
    %c0_i32 = arith.constant 0 : i32
    %c0_i32_0 = arith.constant 0 : i32
    return %arg0, %arg1, %arg3, %c0_i32 : i32, i32, i32, i32
  }
  func.func @transform_2(%arg0: i32, %arg1: i32, %arg2: i32, %arg3: i32) -> (i32, i32, i32, i32) {
    %c0_i32 = arith.constant 0 : i32
    %c0_i32_0 = arith.constant 0 : i32
    return %arg0, %arg1, %arg3, %c0_i32 : i32, i32, i32, i32
  }
  func.func @transform_3(%arg0: i32, %arg1: i32, %arg2: i32, %arg3: i32) -> (i32, i32, i32, i32) {
    %c0_i32 = arith.constant 0 : i32
    %c0_i32_0 = arith.constant 0 : i32
    return %arg0, %arg1, %arg2, %c0_i32 : i32, i32, i32, i32
  }
}

module attributes {stable_mosaic.version = 11 : i64} {
  func.func @_final_conv_kernel(%arg0: i32, %arg1: memref<1x8x342xf32, #tpu.memory_space<vmem>>, %arg2: memref<1x8x342xf32, #tpu.memory_space<vmem>>, %arg3: memref<8x72xbf16, #tpu.memory_space<vmem>>, %arg4: memref<8x1xf32, #tpu.memory_space<vmem>>, %arg5: memref<1x8x288xf32, #tpu.memory_space<vmem>>) attributes {dimension_semantics = [#tpu.dimension_semantics<parallel>], iteration_bounds = array<i64: 4>, scalar_prefetch = 0 : i64, scratch_operands = 0 : i64, tpu.core_type = #tpu.core_type<tc>, window_params = [{transform_indices = @transform_0, window_bounds = array<i64: 1, 8, 342>}, {transform_indices = @transform_1, window_bounds = array<i64: 1, 8, 342>}, {pipeline_mode = #tpu.pipeline_mode<synchronous>, transform_indices = @transform_2, window_bounds = array<i64: 8, 72>}, {pipeline_mode = #tpu.pipeline_mode<synchronous>, transform_indices = @transform_3, window_bounds = array<i64: 8, 1>}, {transform_indices = @transform_4, window_bounds = array<i64: 1, 8, 288>}]} {
    %c0 = arith.constant 0 : index
    %c0_0 = arith.constant 0 : index
    %c0_1 = arith.constant 0 : index
    %0 = vector.load %arg1[%c0, %c0_0, %c0_1] : memref<1x8x342xf32, #tpu.memory_space<vmem>>, vector<1x8x288xf32>
    %1 = vector.shape_cast %0 : vector<1x8x288xf32> to vector<8x288xf32>
    %c0_2 = arith.constant 0 : index
    %c0_3 = arith.constant 0 : index
    %c1 = arith.constant 1 : index
    %2 = vector.load %arg1[%c0_2, %c0_3, %c1] : memref<1x8x342xf32, #tpu.memory_space<vmem>>, vector<1x8x288xf32>
    %3 = vector.shape_cast %2 : vector<1x8x288xf32> to vector<8x288xf32>
    %c0_4 = arith.constant 0 : index
    %c0_5 = arith.constant 0 : index
    %c2 = arith.constant 2 : index
    %4 = vector.load %arg1[%c0_4, %c0_5, %c2] : memref<1x8x342xf32, #tpu.memory_space<vmem>>, vector<1x8x288xf32>
    %5 = vector.shape_cast %4 : vector<1x8x288xf32> to vector<8x288xf32>
    %c0_6 = arith.constant 0 : index
    %c0_7 = arith.constant 0 : index
    %c18 = arith.constant 18 : index
    %6 = vector.load %arg1[%c0_6, %c0_7, %c18] : memref<1x8x342xf32, #tpu.memory_space<vmem>>, vector<1x8x288xf32>
    %7 = vector.shape_cast %6 : vector<1x8x288xf32> to vector<8x288xf32>
    %c0_8 = arith.constant 0 : index
    %c0_9 = arith.constant 0 : index
    %c19 = arith.constant 19 : index
    %8 = vector.load %arg1[%c0_8, %c0_9, %c19] : memref<1x8x342xf32, #tpu.memory_space<vmem>>, vector<1x8x288xf32>
    %9 = vector.shape_cast %8 : vector<1x8x288xf32> to vector<8x288xf32>
    %c0_10 = arith.constant 0 : index
    %c0_11 = arith.constant 0 : index
    %c20 = arith.constant 20 : index
    %10 = vector.load %arg1[%c0_10, %c0_11, %c20] : memref<1x8x342xf32, #tpu.memory_space<vmem>>, vector<1x8x288xf32>
    %11 = vector.shape_cast %10 : vector<1x8x288xf32> to vector<8x288xf32>
    %c0_12 = arith.constant 0 : index
    %c0_13 = arith.constant 0 : index
    %c36 = arith.constant 36 : index
    %12 = vector.load %arg1[%c0_12, %c0_13, %c36] : memref<1x8x342xf32, #tpu.memory_space<vmem>>, vector<1x8x288xf32>
    %13 = vector.shape_cast %12 : vector<1x8x288xf32> to vector<8x288xf32>
    %c0_14 = arith.constant 0 : index
    %c0_15 = arith.constant 0 : index
    %c37 = arith.constant 37 : index
    %14 = vector.load %arg1[%c0_14, %c0_15, %c37] : memref<1x8x342xf32, #tpu.memory_space<vmem>>, vector<1x8x288xf32>
    %15 = vector.shape_cast %14 : vector<1x8x288xf32> to vector<8x288xf32>
    %c0_16 = arith.constant 0 : index
    %c0_17 = arith.constant 0 : index
    %c38 = arith.constant 38 : index
    %16 = vector.load %arg1[%c0_16, %c0_17, %c38] : memref<1x8x342xf32, #tpu.memory_space<vmem>>, vector<1x8x288xf32>
    %17 = vector.shape_cast %16 : vector<1x8x288xf32> to vector<8x288xf32>
    %18 = tpu.concatenate %1, %3, %5, %7, %9, %11, %13, %15, %17 in 0 : vector<8x288xf32>, vector<8x288xf32>, vector<8x288xf32>, vector<8x288xf32>, vector<8x288xf32>, vector<8x288xf32>, vector<8x288xf32>, vector<8x288xf32>, vector<8x288xf32> -> vector<72x288xf32>
    %19 = arith.truncf %18 : vector<72x288xf32> to vector<72x288xbf16>
    %c0_18 = arith.constant 0 : index
    %c0_19 = arith.constant 0 : index
    %20 = vector.load %arg3[%c0_18, %c0_19] : memref<8x72xbf16, #tpu.memory_space<vmem>>, vector<8x72xbf16>
    %cst = arith.constant dense<0.000000e+00> : vector<8x288xf32>
    %21 = tpu.matmul %20, %19, %cst {dimension_numbers = #tpu.dot_dimension_numbers<[1], [0], [0], [1], [0, 0, 1, 1], [], []>} : vector<8x72xbf16>, vector<72x288xbf16>, vector<8x288xf32> -> vector<8x288xf32>
    %c0_20 = arith.constant 0 : index
    %c0_21 = arith.constant 0 : index
    %22 = vector.load %arg4[%c0_20, %c0_21] : memref<8x1xf32, #tpu.memory_space<vmem>>, vector<8x1xf32>
    %23 = vector.broadcast %22 : vector<8x1xf32> to vector<8x288xf32>
    %24 = arith.addf %21, %23 : vector<8x288xf32>
    %c0_22 = arith.constant 0 : index
    %c0_23 = arith.constant 0 : index
    %c19_24 = arith.constant 19 : index
    %25 = vector.load %arg2[%c0_22, %c0_23, %c19_24] : memref<1x8x342xf32, #tpu.memory_space<vmem>>, vector<1x8x288xf32>
    %26 = vector.shape_cast %25 : vector<1x8x288xf32> to vector<8x288xf32>
    %27 = arith.addf %24, %26 : vector<8x288xf32>
    %c0_25 = arith.constant 0 : index
    %c0_26 = arith.constant 0 : index
    %c0_27 = arith.constant 0 : index
    %28 = vector.load %arg5[%c0_25, %c0_26, %c0_27] : memref<1x8x288xf32, #tpu.memory_space<vmem>>, vector<1x8x288xf32>
    %29 = vector.shape_cast %28 : vector<1x8x288xf32> to vector<8x288xf32>
    %30 = vector.shape_cast %27 : vector<8x288xf32> to vector<1x8x288xf32>
    tpu.vector_store %arg5[%c0_25, %c0_26, %c0_27], %30 {strides = array<i32>} : memref<1x8x288xf32, #tpu.memory_space<vmem>>, vector<1x8x288xf32>,
    return
  }
  func.func @transform_0(%arg0: i32) -> (i32, i32, i32) {
    %c0_i32 = arith.constant 0 : i32
    %c0_i32_0 = arith.constant 0 : i32
    %c0_i32_1 = arith.constant 0 : i32
    return %arg0, %c0_i32, %c0_i32_0 : i32, i32, i32
  }
  func.func @transform_1(%arg0: i32) -> (i32, i32, i32) {
    %c0_i32 = arith.constant 0 : i32
    %c0_i32_0 = arith.constant 0 : i32
    %c0_i32_1 = arith.constant 0 : i32
    return %arg0, %c0_i32, %c0_i32_0 : i32, i32, i32
  }
  func.func @transform_2(%arg0: i32) -> (i32, i32) {
    %c0_i32 = arith.constant 0 : i32
    %c0_i32_0 = arith.constant 0 : i32
    %c0_i32_1 = arith.constant 0 : i32
    return %c0_i32, %c0_i32_0 : i32, i32
  }
  func.func @transform_3(%arg0: i32) -> (i32, i32) {
    %c0_i32 = arith.constant 0 : i32
    %c0_i32_0 = arith.constant 0 : i32
    %c0_i32_1 = arith.constant 0 : i32
    return %c0_i32, %c0_i32_0 : i32, i32
  }
  func.func @transform_4(%arg0: i32) -> (i32, i32, i32) {
    %c0_i32 = arith.constant 0 : i32
    %c0_i32_0 = arith.constant 0 : i32
    %c0_i32_1 = arith.constant 0 : i32
    return %arg0, %c0_i32, %c0_i32_0 : i32, i32, i32
  }
}

</mosaic_0001>

<bundles_post_ra>
// kernel: global_attention_forward.3
= control target key start
LH: loop header
LB: loop body
LE: loop exit
PB: predicated region body
PF: predicated region fallthrough
CT: control target
= control target key end

     0   :  { %s1267_s30 = smov 0   ;;  %s1699_s0 = inlined_call_operand.vmem [shape: f32[4,8,342], index: 0, kind: input, shape index: {}]   ;;  %s1700_s1 = inlined_call_operand.vmem [shape: f32[8,9], index: 1, kind: input, shape index: {}]   ;;  %s1701_s2 = inlined_call_operand.vmem [shape: f32[8,1], index: 2, kind: input, shape index: {}]   ;;  %s1702_s3 = inlined_call_operand.vmem [shape: f32[8,9], index: 3, kind: input, shape index: {}]   ;;  %s1703_s4 = inlined_call_operand.vmem [shape: f32[8,1], index: 4, kind: input, shape index: {}]   ;;  %s1704_s5 = inlined_call_operand.vmem [shape: bf16[8,72], index: 5, kind: input, shape index: {}]   ;;  %s1705_s6 = inlined_call_operand.vmem [shape: f32[8,1], index: 6, kind: input, shape index: {}]   ;;  %s1706_s7 = inlined_call_operand.vmem [shape: f32[4,8,288], index: 7, kind: output, shape index: {0}]   ;;  %s1707_s8 = inlined_call_operand.vmem [shape: f32[4,8,288], index: 8, kind: output, shape index: {1}]   ;;  %s1708_s9 = inlined_call_operand.vmem [shape: f32[4,8,288], index: 9, kind: output, shape index: {2}]  }
   0x1 LB: > { %s1093_s10 = sadd.s32 4294967295, %s1198_s30   ;;  %p1097_p0 = scmp.ge.s32.totalorder %s1198_s30, 1  ;;  %s1198_s30 = sphi %s1267_s30, %s20_s30  }
   0x2   : > { %p292_p1 = scmp.lt.s32.totalorder %s1198_s30, 5 }
   0x4   : > { %p293_p2 = pnand %p1097_p0, %p292_p1 }
   0x5   : > { %p338_p3 = scmp.lt.s32.totalorder (!%p293_p2), %s1093_s10, 3  ;;  %s1205_s19 = smov (!%p293_p2), 92  }
   0x6   : > { %296 = sbr.rel (%p293_p2) target bundleno = 774 (0x306), region = 48  ;;  %s1206_s20 = smov (!%p293_p2), 109  }
   0x7   : > { %s1207_s21 = smov (!%p293_p2), 90   ;;  %s1208_s22 = smov (!%p293_p2), 91  }
   0x8   : > { %s1209_s23 = smov (!%p293_p2), 126   ;;  %s1210_s24 = smov (!%p293_p2), 110  }
   0x9   : > { %s1211_s25 = smov (!%p293_p2), 127   ;;  %s1212_s26 = smov (!%p293_p2), 108  }
   0xb   : > { %v1278_v0 = vld [vmem:[%s1700_s1] sm:$0xff]  ;;  %v1200_v1 = vmov 2   ;;  %v1201_v2 = vmov 1   ;;  %v1202_v4 = vmov 3   ;;  %v1203_v5 = vmov 5   ;;  %s1710_s10 = smov (!%p338_p3, %s1093_s10), 3 }
   0xc   : > { %1135 = vset.pattern.permute.xlu2 %v1200_v1  ;;  %1133 = vset.pattern.permute.xlu1 %v1201_v2  ;;  %v1283_v3 = vld [vmem:[%s1702_s3] sm:$0xff]  ;;  %v1204_v6 = vmov 4   ;;  %s1292_s15 = smul.u32 24, %s1710_s10  ;;  %vm920_vm0 = vcmask 1043456   ;;  %vm402_vm1 = vcmask 1039360   ;;  %vm745_vm2 = vcmask 736256  }
   0xd   : > { %436 = vperm.xlu2 %1135, %v1278_v0   ;;  %387 = vperm.xlu1 %1133, %v1278_v0   ;;  %vm451_vm3 = vcmask 1031168   ;;  %vm696_vm4 = vcmask 744448   ;;  %vm647_vm5 = vcmask 752640   ;;  %vm500_vm6 = vcmask 900096  }
   0xe   : > { %1134 = vset.pattern.permute.xlu0 %v1201_v2  ;;  %s342_s18 = scalar_lea.vmem %s1699_s0, %s1292_s15  ;;  %vm549_vm7 = vcmask 891904   ;;  %vm598_vm8 = vcmask 883712   ;;  %vm916_vm9 = vcmask 588800   ;;  %vm896_vm10 = vcmask 261120  }
   0xf   : > { %412 = vperm.xlu0 %1134, %v1283_v3   ;;  %v1300_v7 = vld [vmem:[%s342_s18] sm:$0xff]  ;;  %v1302_v8 = vld [vmem:[%s342_s18 + $0x10] sm:$0xff]  ;;  %v1314_v10 = vld [vmem:[%s342_s18 + $0x8] sm:$0xff]  ;;  %s357_s18 = scalar_lea.vmem %s1708_s9, %s1292_s15 }
  0x10   : > { %v1306_v9 = vpack.i.bf16 %v1300_v7, %v1302_v8 }
  0x15   : > { %1137 = vset.pattern.permute.xlu2 %v1202_v4  ;;  %1182 = vset.pattern.permute.xlu1 %v1203_v5 }
  0x16   : > { %485 = vperm.xlu2 %1137, %v1278_v0   ;;  %1153 = vrot.lane.b32.xlu1 %v1306_v9, %s1208_s22 }
  0x17   : > { %1136 = vset.pattern.permute.xlu0 %v1200_v1 }
  0x18   : > { %461 = vperm.xlu0 %1136, %v1283_v3  }
  0x1e   : > { %1139 = vset.pattern.permute.xlu2 %v1204_v6 }
  0x1f   : > { %534 = vperm.xlu2 %1139, %v1278_v0  }
  0x20   : > { %1138 = vset.pattern.permute.xlu0 %v1202_v4 }
  0x21   : > { %510 = vperm.xlu0 %1138, %v1283_v3  }
  0x27   : > { %1141 = vset.pattern.permute.xlu2 %v1203_v5 }
  0x28   : > { %583 = vperm.xlu2 %1141, %v1278_v0  }
  0x29   : > { %1140 = vset.pattern.permute.xlu0 %v1204_v6 }
  0x2a   : > { %559 = vperm.xlu0 %1140, %v1283_v3  }
  0x30   : > { %1143 = vrot.lane.b32.xlu2 %v1306_v9, %s1207_s21 }
  0x32   : > { %1148 = vrot.lane.b32.xlu0 %v1306_v9, %s1205_s19 }
  0x38   : > { %860 = vrot.lane.b32.xlu2 %v1314_v10, %s1207_s21 }
  0x3a   : > { %1158 = vrot.lane.b32.xlu0 %v1306_v9, %s1206_s20 }
  0x67   : > { %v437_v11 = vpop.permute.xlu2 %436 }
  0x68   : > { %v439_v12 = vmul.f32 %v437_v11, %v1300_v7  ;;  %v440_v27 = vmul.f32 %v437_v11, %v1314_v10  ;;  %v441_v28 = vmul.f32 %v437_v11, %v1302_v8 }
  0x6a   : > { %445 = vrot.lane.b32.xlu0 %v439_v12, %s1209_s23 }
  0x70   : > { %v486_v13 = vpop.permute.xlu2 %485 }
  0x71   : > { %v488_v14 = vmul.f32 %v486_v13, %v1300_v7  ;;  %v490_v33 = vmul.f32 %v486_v13, %v1302_v8  ;;  %v489_v36 = vmul.f32 %v486_v13, %v1314_v10 }
  0x73   : > { %494 = vrot.lane.b32.xlu0 %v488_v14, %s1210_s24 }
  0x79   : > { %v535_v15 = vpop.permute.xlu2 %534 }
  0x7a   : > { %v537_v16 = vmul.f32 %v535_v15, %v1300_v7  ;;  %v539_v38 = vmul.f32 %v535_v15, %v1302_v8  ;;  %v538_v44 = vmul.f32 %v535_v15, %v1314_v10 }
  0x7c   : > { %543 = vrot.lane.b32.xlu0 %v537_v16, %s1206_s20 }
  0x7f   : > { %v388_v17 = vpop.permute.xlu1 %387 }
  0x80   : > { %v390_v18 = vmul.f32 %v388_v17, %v1300_v7  ;;  %v391_v19 = vmul.f32 %v388_v17, %v1314_v10  ;;  %v392_v24 = vmul.f32 %v388_v17, %v1302_v8 }
  0x81   : > { %v413_v22 = vpop.permute.xlu0 %412 }
  0x82   : > { %v1328_v20 = vpop.permute.xlu2 %583  ;;  %398 = vrot.lane.b32.xlu2 %v391_v19, %s1211_s25  ;;  %396 = vrot.lane.b32.xlu1 %v390_v18, %s1211_s25  ;;  %v415_v23 = vmul.f32 %v413_v22, %v1300_v7  ;;  %v416_v25 = vmul.f32 %v413_v22, %v1314_v10  ;;  %v417_v26 = vmul.f32 %v413_v22, %v1302_v8 }
  0x83   : > { %v586_v21 = vmul.f32 %v1328_v20, %v1300_v7  ;;  %v588_v32 = vmul.f32 %v1328_v20, %v1302_v8  ;;  %v587_v57 = vmul.f32 %v1328_v20, %v1314_v10 }
  0x85   : > { %592 = vrot.lane.b32.xlu0 %v586_v21, %s1212_s26 }
  0x88   : > { %v1383_v49 = vpop.permute.xlu1 %1153 }
  0x89   : > { %v1155_v51 = vunpack.i.l.bf16 %v1383_v49 }
  0x8a   : > { %400 = vrot.lane.b32.xlu2 %v392_v24, %s1211_s25  ;;  %421 = vrot.lane.b32.xlu1 %v415_v23, %s1211_s25  ;;  %v462_v29 = vpop.permute.xlu0 %461  ;;  %v1144_v43 = vpop.permute.xlu2 %1143 }
  0x8b   : > { %v464_v30 = vmul.f32 %v462_v29, %v1300_v7  ;;  %v465_v31 = vmul.f32 %v462_v29, %v1314_v10  ;;  %v466_v34 = vmul.f32 %v462_v29, %v1302_v8  ;;  %v1145_v45 = vunpack.i.l.bf16 %v1144_v43 }
  0x8c   : > { %v1146_v2 = vunpack.i.h.bf16 %v1144_v43 }
  0x8d   : > { %849 = vrot.lane.b32.xlu0 %v1314_v10, %s1208_s22  ;;  %v884_v47 = vpack.c.bf16 %v1145_v45, %v1145_v45 }
  0x8f   : > { %v928_v50 = vsel %vm920_vm0, %v884_v47, 0 }
  0x90   : > { %959 = vmatpush.bf16.msra.mxu2 %v928_v50 }
  0x92   : > { %423 = vrot.lane.b32.xlu2 %v416_v25, %s1211_s25  ;;  %425 = vrot.lane.b32.xlu1 %v417_v26, %s1211_s25  ;;  %v861_v54 = vpop.permute.xlu2 %860 }
  0x93   : > { %v511_v35 = vpop.permute.xlu0 %510  ;;  %v864_v11 = vsel %vm745_vm2, %v1146_v2, %v861_v54  ;;  %v865_v12 = vsel %vm745_vm2, %v861_v54, %v1145_v45 }
  0x94   : > { %v514_v37 = vmul.f32 %v511_v35, %v1314_v10  ;;  %v513_v39 = vmul.f32 %v511_v35, %v1300_v7  ;;  %v515_v42 = vmul.f32 %v511_v35, %v1302_v8  ;;  %v882_v13 = vpack.c.bf16 %v864_v11, %v864_v11 }
  0x95   : > { %816 = vrot.lane.b32.xlu0 %v1314_v10, %s1206_s20  ;;  %v883_v14 = vpack.c.bf16 %v865_v12, %v865_v12 }
  0x96   : > { %v922_v16 = vsel %vm920_vm0, %v882_v13, 0 }
  0x97   : > { %v925_v17 = vsel %vm920_vm0, %v883_v14, 0  ;;  %933 = vmatpush.bf16.msra.mxu0 %v922_v16 }
  0x98   : > { %946 = vmatpush.bf16.msra.mxu1 %v925_v17 }
  0x9a   : > { %449 = vrot.lane.b32.xlu2 %v441_v28, %s1209_s23  ;;  %447 = vrot.lane.b32.xlu1 %v440_v27, %s1209_s23 }
  0x9c   : > { %v560_v40 = vpop.permute.xlu0 %559 }
  0x9d   : > { %794 = vrot.lane.b32.xlu0 %v1314_v10, %s1209_s23  ;;  %v563_v41 = vmul.f32 %v560_v40, %v1314_v10  ;;  %v562_v52 = vmul.f32 %v560_v40, %v1300_v7  ;;  %v564_v55 = vmul.f32 %v560_v40, %v1302_v8 }
  0xa2   : > { %472 = vrot.lane.b32.xlu2 %v465_v31, %s1209_s23  ;;  %470 = vrot.lane.b32.xlu1 %v464_v30, %s1209_s23 }
  0xa4   : > { %v1380_v46 = vpop.permute.xlu0 %1148 }
  0xa5   : > { %596 = vrot.lane.b32.xlu0 %v588_v32, %s1212_s26  ;;  %v1150_v48 = vunpack.i.l.bf16 %v1380_v46  ;;  %v1151_v30 = vunpack.i.h.bf16 %v1380_v46  ;;  %v1156_v32 = vunpack.i.h.bf16 %v1383_v49 }
  0xa7   : > { %v881_v53 = vpack.c.bf16 %v1155_v51, %v1150_v48 }
  0xa9   : > { %960 = vmatpush.bf16.msra.mxu2 %v881_v53 }
  0xaa   : > { %498 = vrot.lane.b32.xlu2 %v490_v33, %s1210_s24  ;;  %474 = vrot.lane.b32.xlu1 %v466_v34, %s1209_s23 }
  0xac   : > { %v1408_v60 = vpop.permute.xlu0 %1158 }
  0xad   : > { %v1160_v53 = vunpack.i.l.bf16 %v1408_v60  ;;  %v1161_v11 = vunpack.i.h.bf16 %v1408_v60 }
  0xb2   : > { %521 = vrot.lane.b32.xlu2 %v514_v37, %s1210_s24  ;;  %496 = vrot.lane.b32.xlu1 %v489_v36, %s1210_s24 }
  0xba   : > { %547 = vrot.lane.b32.xlu2 %v539_v38, %s1206_s20  ;;  %519 = vrot.lane.b32.xlu1 %v513_v39, %s1210_s24 }
  0xc2   : > { %570 = vrot.lane.b32.xlu2 %v563_v41, %s1206_s20  ;;  %523 = vrot.lane.b32.xlu1 %v515_v42, %s1210_s24 }
  0xca   : > { %838 = vrot.lane.b32.xlu2 %v1314_v10, %s1205_s19  ;;  %545 = vrot.lane.b32.xlu1 %v538_v44, %s1206_s20 }
  0xd2   : > { %568 = vrot.lane.b32.xlu1 %v562_v52, %s1206_s20  ;;  %1173 = vrot.lane.b32.xlu2 %v1306_v9, %s1210_s24 }
  0xda   : > { %572 = vrot.lane.b32.xlu1 %v564_v55, %s1206_s20  ;;  %1178 = vrot.lane.b32.xlu2 %v1306_v9, %s1211_s25 }
  0xdc   : > { %v1395_v56 = vpop.permute.xlu2 %398  ;;  %v446_v1 = vpop.permute.xlu0 %445 }
  0xe2   : > { %594 = vrot.lane.b32.xlu1 %v587_v57, %s1212_s26  ;;  %783 = vrot.lane.b32.xlu2 %v1314_v10, %s1211_s25 }
  0xe4   : > { %v1400_v58 = vpop.permute.xlu2 %400 }
  0xe5   : > { %v495_v15 = vpop.permute.xlu0 %494 }
  0xea   : > { %1163 = vrot.lane.b32.xlu1 %v1306_v9, %s1212_s26 }
  0xec   : > { %v1406_v59 = vpop.permute.xlu2 %423 }
  0xee   : > { %v544_v22 = vpop.permute.xlu0 %543 }
  0xf2   : > { %1168 = vrot.lane.b32.xlu1 %v1306_v9, %s1209_s23 }
  0xf4   : > { %v1412_v61 = vpop.permute.xlu2 %449  ;;  %v397_v62 = vpop.permute.xlu1 %396 }
  0xf5   : > { %v1416_v63 = vsel %vm402_vm1, %v397_v62, %v1395_v56 }
  0xf7   : > { %v1451_v27 = vpop.permute.xlu0 %592 }
  0xfa   : > { %827 = vrot.lane.b32.xlu1 %v1314_v10, %s1212_s26 }
  0xfc   : > { %v1420_v4 = vpop.permute.xlu2 %472  ;;  %v422_v5 = vpop.permute.xlu1 %421 }
  0xfd   : > { %v1424_v6 = vsel %vm402_vm1, %v422_v5, %v1406_v59 }
  0xff   : > { %v850_v31 = vpop.permute.xlu0 %849 }
 0x100   : > { %v853_v33 = vsel %vm696_vm4, %v1156_v32, %v850_v31  ;;  %v854_v36 = vsel %vm696_vm4, %v850_v31, %v1155_v51 }
 0x102   : > { %805 = vrot.lane.b32.xlu1 %v1314_v10, %s1210_s24  ;;  %s347_s24 = scalar_lea.vmem %s1706_s7, %s1292_s15 }
 0x104   : > { %v1432_v18 = vpop.permute.xlu2 %498  ;;  %v1434_v19 = vpop.permute.xlu1 %425 }
 0x107   : > { %v817_v13 = vpop.permute.xlu0 %816 }
 0x108   : > { %v820_v14 = vsel %vm549_vm7, %v1161_v11, %v817_v13 }
 0x10a   : > { %608 = vperm.xlu1 %1182, %v1283_v3  }
 0x10c   : > { %v1437_v20 = vpop.permute.xlu2 %521  ;;  %v1439_v21 = vpop.permute.xlu1 %447 }
 0x10d   : > { %v1443_v23 = vsel %vm451_vm3, %v446_v1, %v1439_v21  ;;  %v1213_v1 = vmov 6  }
 0x10e   : > { %1183 = vset.pattern.permute.xlu2 %v1213_v1  ;;  %1184 = vset.pattern.permute.xlu0 %v1213_v1 }
 0x10f   : > { %v795_v32 = vpop.permute.xlu0 %794 }
 0x114   : > { %v1445_v24 = vpop.permute.xlu2 %547  ;;  %v471_v25 = vpop.permute.xlu1 %470 }
 0x115   : > { %v1449_v26 = vsel %vm451_vm3, %v471_v25, %v1420_v4 }
 0x11c   : > { %v571_v28 = vpop.permute.xlu2 %570  ;;  %v1453_v29 = vpop.permute.xlu1 %474 }
 0x124   : > { %v839_v34 = vpop.permute.xlu2 %838  ;;  %v1458_v35 = vpop.permute.xlu1 %496 }
 0x125   : > { %v842_v37 = vsel %vm647_vm5, %v1151_v30, %v839_v34  ;;  %v843_v38 = vsel %vm647_vm5, %v839_v34, %v1150_v48  ;;  %v1469_v39 = vsel %vm500_vm6, %v495_v15, %v1458_v35  ;;  %v821_v15 = vsel %vm549_vm7, %v817_v13, %v1160_v53 }
 0x126   : > { %v879_v40 = vpack.c.bf16 %v853_v33, %v842_v37  ;;  %v880_v41 = vpack.c.bf16 %v854_v36, %v843_v38 }
 0x128   : > { %934 = vmatpush.bf16.msra.mxu0 %v879_v40  ;;  %947 = vmatpush.bf16.msra.mxu1 %v880_v41 }
 0x12c   : > { %v520_v42 = vpop.permute.xlu1 %519  ;;  %v1174_v62 = vpop.permute.xlu2 %1173 }
 0x12d   : > { %v1473_v43 = vsel %vm500_vm6, %v520_v42, %v1437_v20  ;;  %v1175_v9 = vunpack.i.l.bf16 %v1174_v62  ;;  %v1176_v31 = vunpack.i.h.bf16 %v1174_v62 }
 0x134   : > { %v1475_v44 = vpop.permute.xlu1 %523 }
 0x13c   : > { %v546_v45 = vpop.permute.xlu1 %545 }
 0x13d   : > { %v1478_v46 = vsel %vm549_vm7, %v544_v22, %v546_v45  ;;  %v1482_v47 = vsel %vm549_vm7, %v546_v45, %v1445_v24 }
 0x144   : > { %v569_v48 = vpop.permute.xlu1 %568 }
 0x145   : > { %v1485_v49 = vsel %vm549_vm7, %v569_v48, %v571_v28 }
 0x14c   : > { %v1489_v50 = vpop.permute.xlu1 %572 }
 0x14d   : > { %v1493_v51 = vsel %vm549_vm7, %v571_v28, %v1489_v50 }
 0x154   : > { %v1497_v52 = vpop.permute.xlu1 %594 }
 0x15c   : > { %v1164_v54 = vpop.permute.xlu1 %1163 }
 0x15d   : > { %v1165_v55 = vunpack.i.l.bf16 %v1164_v54  ;;  %v1166_v16 = vunpack.i.h.bf16 %v1164_v54  ;;  %v1179_v54 = vpop.permute.xlu2 %1178 }
 0x15e   : > { %v1181_v62 = vunpack.i.h.bf16 %v1179_v54 }
 0x15f   : > { %v878_v57 = vpack.c.bf16 %v1165_v55, %v1160_v53 }
 0x161   : > { %961 = vmatpush.bf16.msra.mxu2 %v878_v57 }
 0x164   : > { %v1169_v2 = vpop.permute.xlu1 %1168 }
 0x165   : > { %v1170_v5 = vunpack.i.l.bf16 %v1169_v2  ;;  %v1171_v60 = vunpack.i.h.bf16 %v1169_v2  ;;  %v784_v1 = vpop.permute.xlu2 %783 }
 0x167   : > { %v875_v12 = vpack.c.bf16 %v1175_v9, %v1170_v5  ;;  %v798_v37 = vsel %vm451_vm3, %v1171_v60, %v795_v32  ;;  %v799_v38 = vsel %vm451_vm3, %v795_v32, %v1170_v5 }
 0x169   : > { %962 = vmatpush.bf16.msra.mxu2 %v875_v12  ;;  %v1214_v12 = vmov 7  }
 0x16a   : > { %1186 = vset.pattern.permute.xlu1 %v1214_v12 }
 0x16c   : > { %v828_v17 = vpop.permute.xlu1 %827 }
 0x16d   : > { %v831_v22 = vsel %vm598_vm8, %v1166_v16, %v828_v17  ;;  %v832_v25 = vsel %vm598_vm8, %v828_v17, %v1165_v55  ;;  %v1180_v55 = vunpack.i.l.bf16 %v1179_v54 }
 0x16e   : > { %v876_v28 = vpack.c.bf16 %v831_v22, %v820_v14  ;;  %v877_v30 = vpack.c.bf16 %v832_v25, %v821_v15  ;;  %v1215_v22 = vmov 8   ;;  %v1216_v25 = vmov 0  }
 0x16f   : > { %v872_v57 = vpack.c.bf16 %v1180_v55, %v1302_v8  ;;  %v788_v2 = vsel %vm402_vm1, %v784_v1, %v1180_v55 }
 0x170   : > { %935 = vmatpush.bf16.msra.mxu0 %v876_v28  ;;  %948 = vmatpush.bf16.msra.mxu1 %v877_v30  ;;  %v871_v11 = vpack.c.bf16 %v788_v2, %v1314_v10  ;;  %v1536_v28 = vpop.permute.xlu0 %596  ;;  %v869_v30 = vld [vmem:[%s1704_s5] sm:$0xf]  ;;  %v453_v2 = vsel %vm451_vm3, %v1439_v21, %v1412_v61 }
 0x171   : > { %963 = vmatpush.bf16.msra.mxu2 %v872_v57  ;;  %v404_v57 = vsel %vm402_vm1, %v1395_v56, %v1400_v58  ;;  %v502_v56 = vsel %vm500_vm6, %v1458_v35, %v1432_v18 }
 0x174   : > { %v806_v33 = vpop.permute.xlu1 %805  ;;  %1104 = vmatmul.msk.bf16.vlgmr.msra.gmra.mxu2 %vm916_vm9, %v869_v30 }
 0x175   : > { %v809_v34 = vsel %vm500_vm6, %v1176_v31, %v806_v33  ;;  %v810_v36 = vsel %vm500_vm6, %v806_v33, %v1175_v9  ;;  %v787_v9 = vsel %vm402_vm1, %v1181_v62, %v784_v1 }
 0x176   : > { %v873_v40 = vpack.c.bf16 %v809_v34, %v798_v37  ;;  %v874_v41 = vpack.c.bf16 %v810_v36, %v799_v38  ;;  %v870_v5 = vpack.c.bf16 %v787_v9, %v1300_v7 }
 0x178   : > { %936 = vmatpush.bf16.msra.mxu0 %v873_v40  ;;  %949 = vmatpush.bf16.msra.mxu1 %v874_v41 }
 0x17c   : > { %v609_v42 = vpop.permute.xlu1 %608  ;;  %937 = vmatpush.bf16.msra.mxu0 %v870_v5  ;;  %950 = vmatpush.bf16.msra.mxu1 %v871_v11 }
 0x17d   : > { %v611_v45 = vmul.f32 %v609_v42, %v1300_v7  ;;  %v612_v48 = vmul.f32 %v609_v42, %v1314_v10  ;;  %v613_v53 = vmul.f32 %v609_v42, %v1302_v8 }
 0x17f   : > { %621 = vrot.lane.b32.xlu1 %v613_v53, %s1212_s26  ;;  %619 = vrot.lane.b32.xlu0 %v612_v48, %s1212_s26 }
 0x180   : > { %617 = vrot.lane.b32.xlu2 %v611_v45, %s1212_s26  ;;  %1102 = vmatmul.msk.bf16.vlgmr.msra.gmra.mxu0 %vm916_vm9, %v869_v30 }
 0x181   : > { %1103 = vmatmul.msk.bf16.vlgmr.msra.gmra.mxu1 %vm916_vm9, %v869_v30  ;;  %v600_v30 = vsel %vm598_vm8, %v1497_v52, %v1536_v28 }
 0x188   : > { %632 = vperm.xlu2 %1183, %v1278_v0  }
 0x190   : > { %1187 = vset.pattern.permute.xlu2 %v1214_v12 }
 0x1da   : > { %v1521_v13 = vpop.permute.xlu2 %617 }
 0x1e2   : > { %v633_v14 = vpop.permute.xlu2 %632 }
 0x1e3   : > { %v635_v15 = vmul.f32 %v633_v14, %v1300_v7  ;;  %v636_v16 = vmul.f32 %v633_v14, %v1314_v10  ;;  %v637_v17 = vmul.f32 %v633_v14, %v1302_v8 }
 0x1e5   : > { %645 = vrot.lane.b32.xlu2 %v637_v17, %s1205_s19  ;;  %643 = vrot.lane.b32.xlu1 %v636_v16, %s1205_s19 }
 0x1e6   : > { %641 = vrot.lane.b32.xlu0 %v635_v15, %s1205_s19 }
 0x1ed   : > { %681 = vperm.xlu1 %1186, %v1278_v0   ;;  %706 = vperm.xlu2 %1187, %v1283_v3  }
 0x1ee   : > { %657 = vperm.xlu0 %1184, %v1283_v3  }
 0x1f1   : > { %v1541_v31 = vpop.permute.xlu1 %621  ;;  %v1543_v60 = vpop.permute.xlu0 %619 }
 0x1f5   : > { %1188 = vset.pattern.permute.xlu1 %v1215_v22  ;;  %1189 = vset.pattern.permute.xlu2 %v1215_v22 }
 0x1f6   : > { %1185 = vset.pattern.permute.xlu0 %v1216_v25  ;;  %730 = vperm.xlu1 %1188, %v1278_v0  }
 0x1f7   : > { %366 = vperm.xlu0 %1185, %v1278_v0   ;;  %755 = vperm.xlu2 %1189, %v1283_v3  }
 0x1fe   : > { %1190 = vset.pattern.permute.xlu1 %v1216_v25 }
 0x1ff   : > { %377 = vperm.xlu0 %1185, %v1283_v3   ;;  %1191 = vset.pattern.permute.xlu2 %v1216_v25  ;;  %v599_v25 = vsel %vm598_vm8, %v1451_v27, %v1497_v52  ;;  %v526_v27 = vsel %vm500_vm6, %v1437_v20, %v1475_v44 }
 0x23f   : > { %v1545_v0 = vpop.permute.xlu2 %645 }
 0x247   : > { %v707_v9 = vpop.permute.xlu2 %706 }
 0x248   : > { %v710_v12 = vmul.f32 %v707_v9, %v1314_v10  ;;  %v711_v14 = vmul.f32 %v707_v9, %v1302_v8  ;;  %v709_v16 = vmul.f32 %v707_v9, %v1300_v7  ;;  %v965_v9 = vpop.f32.mrf.mxu2 }
 0x257   : > { %v644_v32 = vpop.permute.xlu1 %643 }
 0x258   : > { %v649_v3 = vsel %vm647_vm5, %v644_v32, %v1545_v0  ;;  %v642_v33 = vpop.permute.xlu0 %641 }
 0x259   : > { %v648_v34 = vsel %vm647_vm5, %v642_v33, %v644_v32 }
 0x25f   : > { %v682_v41 = vpop.permute.xlu1 %681 }
 0x260   : > { %v658_v36 = vpop.permute.xlu0 %657  ;;  %v685_v42 = vmul.f32 %v682_v41, %v1314_v10  ;;  %v686_v45 = vmul.f32 %v682_v41, %v1302_v8  ;;  %v684_v48 = vmul.f32 %v682_v41, %v1300_v7 }
 0x261   : > { %v660_v37 = vmul.f32 %v658_v36, %v1300_v7  ;;  %v661_v38 = vmul.f32 %v658_v36, %v1314_v10  ;;  %v662_v40 = vmul.f32 %v658_v36, %v1302_v8 }
 0x263   : > { %670 = vrot.lane.b32.xlu2 %v662_v40, %s1205_s19  ;;  %668 = vrot.lane.b32.xlu1 %v661_v38, %s1205_s19 }
 0x264   : > { %666 = vrot.lane.b32.xlu0 %v660_v37, %s1205_s19 }
 0x269   : > { %v1559_v53 = vpop.permute.xlu0 %366 }
 0x26a   : > { %v369_v54 = vmul.f32 %v1559_v53, %v1300_v7  ;;  %v370_v55 = vmul.f32 %v1559_v53, %v1314_v10 }
 0x26b   : > { %694 = vrot.lane.b32.xlu2 %v686_v45, %s1208_s22  ;;  %692 = vrot.lane.b32.xlu1 %v685_v42, %s1208_s22 }
 0x26c   : > { %v408_v62 = vadd.f32 %v1416_v63, %v369_v54  ;;  %v409_v1 = vadd.f32 %v404_v57, %v370_v55  ;;  %690 = vrot.lane.b32.xlu0 %v684_v48, %s1208_s22 }
 0x26e   : > { %v457_v5 = vadd.f32 %v1443_v23, %v408_v62  ;;  %v458_v11 = vadd.f32 %v453_v2, %v409_v1  ;;  %v428_v23 = vsel %vm402_vm1, %v1406_v59, %v1434_v19  ;;  %v731_v59 = vpop.permute.xlu1 %730  ;;  %v939_v62 = vpop.f32.mrf.mxu0 }
 0x26f   : > { %v734_v52 = vmul.f32 %v731_v59, %v1314_v10  ;;  %v733_v42 = vmul.f32 %v731_v59, %v1300_v7  ;;  %v952_v1 = vpop.f32.mrf.mxu1 }
 0x270   : > { %v506_v63 = vadd.f32 %v1469_v39, %v457_v5  ;;  %v507_v15 = vadd.f32 %v502_v56, %v458_v11 }
 0x271   : > { %v378_v17 = vpop.permute.xlu0 %377 }
 0x272   : > { %v380_v22 = vmul.f32 %v378_v17, %v1300_v7  ;;  %v381_v21 = vmul.f32 %v378_v17, %v1314_v10  ;;  %v556_v35 = vadd.f32 %v1482_v47, %v507_v15  ;;  %v555_v39 = vadd.f32 %v1478_v46, %v506_v63 }
 0x273   : > { %719 = vrot.lane.b32.xlu2 %v711_v14, %s1208_s22  ;;  %717 = vrot.lane.b32.xlu1 %v710_v12, %s1208_s22  ;;  %v477_v47 = vsel %vm451_vm3, %v1420_v4, %v1453_v29  ;;  %v967_v14 = vpop.f32.mrf.mxu2 }
 0x274   : > { %v432_v32 = vadd.f32 %v1424_v6, %v380_v22  ;;  %v433_v33 = vadd.f32 %v428_v23, %v381_v21  ;;  %715 = vrot.lane.b32.xlu0 %v709_v16, %s1208_s22  ;;  %v605_v36 = vadd.f32 %v600_v30, %v556_v35  ;;  %v604_v46 = vadd.f32 %v599_v25, %v555_v39 }
 0x275   : > { %v735_v6 = vmul.f32 %v731_v59, %v1302_v8  ;;  %v382_v22 = vmul.f32 %v378_v17, %v1302_v8  ;;  %v371_v21 = vmul.f32 %v1559_v53, %v1302_v8 }
 0x276   : > { %v481_v37 = vadd.f32 %v1449_v26, %v432_v32  ;;  %v482_v38 = vadd.f32 %v477_v47, %v433_v33  ;;  %v1609_v40 = vadd.f32 %v649_v3, %v605_v36  ;;  %v1611_v41 = vadd.f32 %v648_v34, %v604_v46  ;;  %v756_v3 = vpop.permute.xlu2 %755  ;;  %v941_v56 = vpop.f32.mrf.mxu0 }
 0x277   : > { %v623_v26 = vsel %vm598_vm8, %v1521_v13, %v1543_v60  ;;  %v758_v54 = vmul.f32 %v756_v3, %v1300_v7  ;;  %v910_v13 = vld [vmem:[%s1705_s6] sm:$0xff]  ;;  %v954_v12 = vpop.f32.mrf.mxu1  ;;  %v434_v39 = vadd.f32 %v1434_v19, %v382_v22  ;;  %v410_v59 = vadd.f32 %v1400_v58, %v371_v21 }
 0x278   : > { %v531_v4 = vadd.f32 %v526_v27, %v482_v38  ;;  %v530_v45 = vadd.f32 %v1473_v43, %v481_v37  ;;  %v759_v43 = vmul.f32 %v756_v3, %v1314_v10  ;;  %v885_v10 = vld [vmem:[%s1701_s2] sm:$0xff]  ;;  %v624_v58 = vsel %vm598_vm8, %v1543_v60, %v1541_v31 }
 0x279   : > { %v483_v17 = vadd.f32 %v1453_v29, %v434_v39 }
 0x27a   : > { %v1616_v48 = vadd.f32 %v1493_v51, %v531_v4  ;;  %v579_v20 = vadd.f32 %v1485_v49, %v530_v45  ;;  %v760_v51 = vmul.f32 %v756_v3, %v1302_v8  ;;  %v898_v49 = vld [vmem:[%s1703_s4] sm:$0xff]  ;;  %v459_v8 = vadd.f32 %v1412_v61, %v410_v59 }
 0x27b   : > { %743 = vrot.lane.b32.xlu2 %v735_v6, %s1207_s21  ;;  %741 = vrot.lane.b32.xlu1 %v734_v52, %s1207_s21  ;;  %v532_v47 = vadd.f32 %v1475_v44, %v483_v17 }
 0x27c   : > { %739 = vrot.lane.b32.xlu0 %v733_v42, %s1207_s21  ;;  %v1625_v34 = vadd.f32 %v623_v26, %v579_v20  ;;  %v508_v19 = vadd.f32 %v1432_v18, %v459_v8  ;;  %v629_v44 = vadd.f32 %v624_v58, %v1616_v48 }
 0x27d   : > { %v581_v46 = vadd.f32 %v1489_v50, %v532_v47 }
 0x27e   : > { %v557_v27 = vadd.f32 %v1445_v24, %v508_v19 }
 0x27f   : > { %v630_v61 = vadd.f32 %v1541_v31, %v581_v46 }
 0x280   : > { %v606_v18 = vadd.f32 %v1536_v28, %v557_v27 }
 0x283   : > { %768 = vrot.lane.b32.xlu2 %v760_v51, %s1207_s21  ;;  %766 = vrot.lane.b32.xlu1 %v759_v43, %s1207_s21  ;;  %v655_v43 = vadd.f32 %v1545_v0, %v606_v18 }
 0x284   : > { %764 = vrot.lane.b32.xlu0 %v758_v54, %s1207_s21  ;;  %s352_s21 = scalar_lea.vmem %s1707_s8, %s1292_s15 }
 0x28b   : > { %901 = vperm.xlu1 %1190, %v898_v49   ;;  %913 = vperm.xlu2 %1191, %v910_v13  }
 0x28c   : > { %888 = vperm.xlu0 %1185, %v885_v10  }
 0x2bd   : > { %v671_v7 = vpop.permute.xlu2 %670 }
 0x2be   : > { %v679_v6 = vadd.f32 %v671_v7, %v630_v61 }
 0x2c5   : > { %v1642_v55 = vpop.permute.xlu2 %694 }
 0x2cd   : > { %v720_v57 = vpop.permute.xlu2 %719 }
 0x2ce   : > { %v728_v20 = vadd.f32 %v720_v57, %v679_v6 }
 0x2d5   : > { %v1644_v2 = vpop.permute.xlu2 %743  ;;  %v669_v5 = vpop.permute.xlu1 %668 }
 0x2d6   : > { %v667_v11 = vpop.permute.xlu0 %666  ;;  %v673_v29 = vsel %vm647_vm5, %v669_v5, %v671_v7  ;;  %v704_v7 = vadd.f32 %v1642_v55, %v655_v43 }
 0x2d7   : > { %v672_v37 = vsel %vm647_vm5, %v667_v11, %v669_v5  ;;  %v678_v42 = vadd.f32 %v673_v29, %v629_v44 }
 0x2d8   : > { %v677_v60 = vadd.f32 %v672_v37, %v1625_v34  ;;  %v753_v11 = vadd.f32 %v1644_v2, %v704_v7 }
 0x2dd   : > { %v769_v63 = vpop.permute.xlu2 %768  ;;  %v693_v15 = vpop.permute.xlu1 %692 }
 0x2de   : > { %v691_v16 = vpop.permute.xlu0 %690  ;;  %v698_v45 = vsel %vm696_vm4, %v693_v15, %v1642_v55  ;;  %v777_v54 = vadd.f32 %v769_v63, %v728_v20 }
 0x2df   : > { %v697_v4 = vsel %vm696_vm4, %v691_v16, %v693_v15  ;;  %v703_v49 = vadd.f32 %v698_v45, %v1609_v40 }
 0x2e0   : > { %v702_v51 = vadd.f32 %v697_v4, %v1611_v41 }
 0x2e5   : > { %v718_v23 = vpop.permute.xlu1 %717  ;;  %v914_v35 = vpop.permute.xlu2 %913 }
 0x2e6   : > { %v716_v25 = vpop.permute.xlu0 %715  ;;  %v940_v30 = vadd.f32 %v939_v62, %v914_v35  ;;  %v953_v32 = vadd.f32 %v952_v1, %v914_v35  ;;  %v966_v33 = vadd.f32 %v965_v9, %v914_v35  ;;  %v722_v50 = vsel %vm696_vm4, %v718_v23, %v720_v57 }
 0x2e7   : > { %v721_v24 = vsel %vm696_vm4, %v716_v25, %v718_v23  ;;  %v727_v28 = vadd.f32 %v722_v50, %v678_v42 }
 0x2e8   : > { %969 = vst [vmem:[%s357_s18] sm:$0xff] %v940_v30  ;;  %v726_v26 = vadd.f32 %v721_v24, %v677_v60 }
 0x2e9   : > { %970 = vst [vmem:[%s357_s18 + $0x8] sm:$0xff] %v953_v32 }
 0x2ea   : > { %971 = vst.msk [vmem:[%s357_s18 + $0x10] sm:$0xff] %vm896_vm10, %v966_v33 }
 0x2ed   : > { %v742_v53 = vpop.permute.xlu1 %741 }
 0x2ee   : > { %v740_v36 = vpop.permute.xlu0 %739  ;;  %v747_v34 = vsel %vm745_vm2, %v742_v53, %v1644_v2 }
 0x2ef   : > { %v746_v3 = vsel %vm745_vm2, %v740_v36, %v742_v53  ;;  %v752_v0 = vadd.f32 %v747_v34, %v703_v49 }
 0x2f0   : > { %v751_v57 = vadd.f32 %v746_v3, %v702_v51 }
 0x2f5   : > { %v767_v38 = vpop.permute.xlu1 %766 }
 0x2f6   : > { %v765_v52 = vpop.permute.xlu0 %764  ;;  %v771_v31 = vsel %vm745_vm2, %v767_v38, %v769_v63 }
 0x2f7   : > { %v770_v48 = vsel %vm745_vm2, %v765_v52, %v767_v38  ;;  %v776_v13 = vadd.f32 %v771_v31, %v727_v28 }
 0x2f8   : > { %v775_v10 = vadd.f32 %v770_v48, %v726_v26 }
 0x2fd   : > { %v902_v62 = vpop.permute.xlu1 %901 }
 0x2fe   : > { %v904_v1 = vadd.f32 %v902_v62, %v775_v10  ;;  %v905_v41 = vadd.f32 %v902_v62, %v776_v13  ;;  %v906_v9 = vadd.f32 %v902_v62, %v777_v54  ;;  %v889_v5 = vpop.permute.xlu0 %888 }
 0x2ff   : > { %v891_v56 = vadd.f32 %v889_v5, %v751_v57  ;;  %v892_v40 = vadd.f32 %v889_v5, %v752_v0  ;;  %v893_v55 = vadd.f32 %v889_v5, %v753_v11 }
 0x300   : > { %907 = vst [vmem:[%s352_s21] sm:$0xff] %v904_v1 }
 0x301   : > { %908 = vst [vmem:[%s352_s21 + $0x8] sm:$0xff] %v905_v41 }
 0x302   : > { %909 = vst.msk [vmem:[%s352_s21 + $0x10] sm:$0xff] %vm896_vm10, %v906_v9 }
 0x303   : > { %894 = vst [vmem:[%s347_s24] sm:$0xff] %v891_v56 }
 0x304   : > { %895 = vst [vmem:[%s347_s24 + $0x8] sm:$0xff] %v892_v40 }
 0x305   : > { %897 = vst.msk [vmem:[%s347_s24 + $0x10] sm:$0xff] %vm896_vm10, %v893_v55 }
 0x306 PF: > { %s20_s30 = sadd.s32 1, %s1198_s30  }
 0x307   : > { %p17_p4 = scmp.ge.s32.totalorder %s20_s30, 6  }
 0x309   :  { %19 = sbr.rel (!%p17_p4) target bundleno = 1 (0x1), region = 102 }

// kernel: global_attention_forward.4
= control target key start
LH: loop header
LB: loop body
LE: loop exit
PB: predicated region body
PF: predicated region fallthrough
CT: control target
= control target key end

     0   :  { %s952_s12 = smov 0   ;;  %s954_s13 = smov 0   ;;  %s1047_s0 = inlined_call_operand.vmem [shape: f32[2,1,32,128], index: 0, kind: input, shape index: {}]   ;;  %s1048_s1 = inlined_call_operand.vmem [shape: f32[2,1,32,128], index: 1, kind: input, shape index: {}]   ;;  %s1049_s2 = inlined_call_operand.vmem [shape: f32[2,1,32,128], index: 2, kind: input, shape index: {}]   ;;  %s1050_s3 = inlined_call_operand.vmem [shape: f32[2,1,32,128], index: 3, kind: output, shape index: {}]  }
   0x1   :  { %s956_s14 = smov 0  }
   0x2 LB: > { %s39_s15 = sadd.s32 1, %s923_s13  ;;  %p830_p0 = scmp.ge.s32.totalorder %s927_s14, 1  ;;  %s927_s14 = sphi %s956_s14, %s13_s14   ;;  %s923_s13 = sphi %s954_s13, %s1052_s13   ;;  %s919_s12 = sphi %s952_s12, %s1051_s12  }
   0x3   : > { %p41_p1 = scmp.ge.s32.totalorder %s39_s15, 2  ;;  %p226_p2 = scmp.lt.s32.totalorder %s927_s14, 3 }
   0x5   : > { %s1054_s15 = smov (%p41_p1, %s39_s15), 0  ;;  %p227_p3 = pnand %p830_p0, %p226_p2 }
   0x6   : > { %p293_p4 = scmp.lt.s32.totalorder (!%p227_p3), %s919_s12, 1 }
   0x7   : > { %230 = sbr.rel (%p227_p3) target bundleno = 666 (0x29a), region = 32 }
   0xc   : > { %s1056_s12 = smov (!%p293_p4, %s919_s12), 1  ;;  %vm353_vm0 = vcmask 7168   ;;  %v929_v16 = vmov -inf   ;;  %vm411_vm1 = vcmask 261120   ;;  %v930_v25 = vmov 0  }
   0xd   : > { %s970_s16 = sshll.u32 %s1056_s12, 5  ;;  %354 = vst.msk [vmem:[#allocation2] sm:$0xff] %vm353_vm0, %v929_v16  ;;  %879 = vset.pattern.permute.xlu0 %v930_v25  ;;  %878 = vset.pattern.permute.xlu2 %v930_v25  ;;  %v931_v26 = vmov 0.0  }
   0xe   : > { %s318_s19 = scalar_lea.vmem %s1048_s1, %s970_s16  ;;  %s304_s22 = scalar_lea.vmem %s1047_s0, %s970_s16  ;;  %355 = vst.msk [vmem:[#allocation2 + $0x8] sm:$0xff] %vm353_vm0, %v929_v16  ;;  %880 = vset.pattern.permute.xlu1 %v930_v25 }
   0xf   : > { %v378_v0 = vld [vmem:[%s318_s19 + $0x10] sm:$0xff]  ;;  %v379_v1 = vld [vmem:[%s318_s19 + $0x18] sm:$0xff]  ;;  %v376_v3 = vld [vmem:[%s318_s19] sm:$0xff]  ;;  %356 = vst.msk [vmem:[#allocation2 + $0x10] sm:$0xff] %vm353_vm0, %v929_v16  ;;  %s332_s25 = scalar_lea.vmem %s1049_s2, %s970_s16  ;;  %s346_s28 = scalar_lea.vmem %s1050_s3, %s970_s16 }
  0x10   : > { %v381_v2 = vpack.c.bf16 %v379_v1, %v378_v0  ;;  %v377_v4 = vld [vmem:[%s318_s19 + $0x8] sm:$0xff]  ;;  %v366_v5 = vld [vmem:[%s304_s22] sm:$0xff]  ;;  %v368_v8 = vld [vmem:[%s304_s22 + $0x10] sm:$0xff]  ;;  %357 = vst.msk [vmem:[#allocation2 + $0x18] sm:$0xff] %vm353_vm0, %v929_v16 }
  0x11   : > { %v380_v6 = vpack.c.bf16 %v377_v4, %v376_v3  ;;  %v367_v7 = vld [vmem:[%s304_s22 + $0x8] sm:$0xff]  ;;  %v369_v9 = vld [vmem:[%s304_s22 + $0x18] sm:$0xff]  ;;  %v370_v10 = vmul.f32 0.088388346, %v366_v5  ;;  %v372_v12 = vmul.f32 0.088388346, %v368_v8 }
  0x12   : > { %394 = vmatpush.bf16.xpose.msra.mxu0 %v381_v2  ;;  %847 = vmatpush.bf16.xpose.msra.mxu2 %v381_v2  ;;  %v371_v11 = vmul.f32 0.088388346, %v367_v7  ;;  %v373_v13 = vmul.f32 0.088388346, %v369_v9  ;;  %360 = vst.msk [vmem:[#allocation3 + $0x10] sm:$0xff] %vm353_vm0, %v931_v26  ;;  %v384_v43 = vld [vmem:[%s332_s25 + $0x10] sm:$0xff] }
  0x13   : > { %358 = vst.msk [vmem:[#allocation3] sm:$0xff] %vm353_vm0, %v931_v26  ;;  %v385_v44 = vld [vmem:[%s332_s25 + $0x18] sm:$0xff]  ;;  %v382_v46 = vld [vmem:[%s332_s25] sm:$0xff]  ;;  %v383_v47 = vld [vmem:[%s332_s25 + $0x8] sm:$0xff] }
  0x14   : > { %v374_v14 = vpack.c.bf16 %v371_v11, %v370_v10  ;;  %v375_v15 = vpack.c.bf16 %v373_v13, %v372_v12  ;;  %359 = vst.msk [vmem:[#allocation3 + $0x8] sm:$0xff] %vm353_vm0, %v931_v26  ;;  %v998_v27 = vld [vmem:[#allocation2] sm:$0xff]  ;;  %v387_v45 = vpack.c.bf16 %v385_v44, %v384_v43  ;;  %v386_v48 = vpack.c.bf16 %v383_v47, %v382_v46 }
  0x15   : > { %361 = vst.msk [vmem:[#allocation3 + $0x18] sm:$0xff] %vm353_vm0, %v931_v26  ;;  %v408_v33 = vld [vmem:[#allocation2 + $0x8] sm:$0xff] }
  0x16   : > { %v1008_v31 = vld [vmem:[#allocation2 + $0x10] sm:$0xff]  ;;  %849 = vmatpush.bf16.msra.mxu3 %v387_v45  ;;  %543 = vmatpush.bf16.msra.mxu1 %v387_v45 }
  0x17   : > { %v410_v39 = vld [vmem:[#allocation2 + $0x18] sm:$0xff] }
  0x1a   : > { %395 = vmatpush.bf16.xpose.msra.mxu0 %v380_v6  ;;  %848 = vmatpush.bf16.xpose.msra.mxu2 %v380_v6 }
  0x1b   : > { %850 = vmatpush.bf16.msra.mxu3 %v386_v48  ;;  %544 = vmatpush.bf16.msra.mxu1 %v386_v48 }
  0x21   : > { %396 = vmatmul.bf16.vlgmr.msra.gmra.mxu0 %v374_v14  ;;  %401 = vmatmul.bf16.vlgmr.msra.gmra.mxu2 %v375_v15  ;;  %v474_v15 = vld [vmem:[#allocation3 + $0x10] sm:$0xff] }
  0x9e   : > { %v984_v17 = vpop.f32.mrf.mxu0 }
  0x9f   : > { %v412_v18 = vsel %vm411_vm1, %v984_v17, -inf }
  0xa0   : > { %413 = vmax.xlane.f32.xlu1 %v412_v18 }
  0xa4   : > { %v402_v19 = vpop.f32.mrf.mxu2 }
  0xa5   : > { %v418_v20 = vsel %vm411_vm1, %v402_v19, -inf }
  0xa6   : > { %419 = vmax.xlane.f32.xlu0 %v418_v20  ;;  %v989_v21 = vpop.f32.mrf.mxu0  ;;  %v472_v20 = vld [vmem:[#allocation3] sm:$0xff] }
  0xa7   : > { %v415_v22 = vsel %vm411_vm1, %v989_v21, -inf }
  0xa8   : > { %416 = vmax.xlane.f32.xlu1 %v415_v22 }
  0xac   : > { %v404_v23 = vpop.f32.mrf.mxu2 }
  0xad   : > { %v421_v24 = vsel %vm411_vm1, %v404_v23, -inf }
  0xae   : > { %422 = vmax.xlane.f32.xlu0 %v421_v24 }
 0x113   : > { %v414_v28 = vpop.xlane.xlu1 %413 }
 0x114   : > { %v1001_v29 = vmax.f32 %v998_v27, %v414_v28  ;;  %v475_v28 = vld [vmem:[#allocation3 + $0x18] sm:$0xff] }
 0x116   : > { %v428_v30 = vsub.f32 %v998_v27, %v1001_v29  ;;  %564 = vst.msk [vmem:[#allocation2] sm:$0xff] %vm353_vm0, %v1001_v29  ;;  %442 = vperm.xlu0 %879, %v1001_v29   ;;  %v473_v29 = vld [vmem:[#allocation3 + $0x8] sm:$0xff] }
 0x118   : > { %v432_v7 = vmul.f32 1.442695, %v428_v30 }
 0x119   : > { %v420_v32 = vpop.xlane.xlu0 %419 }
 0x11a   : > { %v426_v34 = vmax.f32 %v1008_v31, %v420_v32 }
 0x11b   : > { %v417_v35 = vpop.xlane.xlu1 %416 }
 0x11c   : > { %v430_v36 = vsub.f32 %v1008_v31, %v426_v34  ;;  %566 = vst.msk [vmem:[#allocation2 + $0x10] sm:$0xff] %vm353_vm0, %v426_v34  ;;  %v425_v37 = vmax.f32 %v408_v33, %v417_v35  ;;  %452 = vperm.xlu2 %878, %v426_v34  }
 0x11e   : > { %v429_v38 = vsub.f32 %v408_v33, %v425_v37  ;;  %565 = vst.msk [vmem:[#allocation2 + $0x8] sm:$0xff] %vm353_vm0, %v425_v37  ;;  %447 = vperm.xlu1 %880, %v425_v37   ;;  %v436_v9 = vmul.f32 1.442695, %v430_v36 }
 0x120   : > { %v434_v8 = vmul.f32 1.442695, %v429_v38 }
 0x121   : > { %v423_v40 = vpop.xlane.xlu0 %422 }
 0x122   : > { %v427_v41 = vmax.f32 %v410_v39, %v423_v40 }
 0x124   : > { %v431_v42 = vsub.f32 %v410_v39, %v427_v41  ;;  %567 = vst.msk [vmem:[#allocation2 + $0x18] sm:$0xff] %vm353_vm0, %v427_v41  ;;  %457 = vperm.xlu2 %878, %v427_v41  }
 0x126   : > { %v438_v12 = vmul.f32 1.442695, %v431_v42 }
 0x176   : > { %v453_v49 = vpop.permute.xlu2 %452 }
 0x177   : > { %v462_v50 = vsub.f32 %v402_v19, %v453_v49 }
 0x179   : > { %v468_v51 = vmul.f32 1.442695, %v462_v50 }
 0x17b   : > { %881 = vpow2.f32 %v468_v51 }
 0x17e   : > { %v458_v52 = vpop.permute.xlu2 %457 }
 0x17f   : > { %v463_v53 = vsub.f32 %v404_v23, %v458_v52 }
 0x181   : > { %v882_v54 = vpop.eup %881  ;;  %v470_v55 = vmul.f32 1.442695, %v463_v53 }
 0x182   : > { %v486_v56 = vsel %vm411_vm1, %v882_v54, 0.0 }
 0x183   : > { %883 = vpow2.f32 %v470_v55  ;;  %487 = vadd.xlane.f32.xlu0 %v486_v56 }
 0x188   : > { %v443_v57 = vpop.permute.xlu0 %442 }
 0x189   : > { %v884_v58 = vpop.eup %883  ;;  %v460_v59 = vsub.f32 %v984_v17, %v443_v57 }
 0x18a   : > { %v530_v60 = vpack.c.bf16 %v884_v58, %v882_v54  ;;  %v489_v4 = vsel %vm411_vm1, %v884_v58, 0.0 }
 0x18b   : > { %v464_v61 = vmul.f32 1.442695, %v460_v59 }
 0x18c   : > { %840 = vmatmul.msk.bf16.vlgmr.msra.gmra.mxu3 %vm411_vm1, %v530_v60 }
 0x18d   : > { %885 = vpow2.f32 %v464_v61 }
 0x190   : > { %v448_v62 = vpop.permute.xlu1 %447 }
 0x191   : > { %v461_v63 = vsub.f32 %v989_v21, %v448_v62 }
 0x193   : > { %v886_v0 = vpop.eup %885  ;;  %v466_v1 = vmul.f32 1.442695, %v461_v63 }
 0x194   : > { %v480_v2 = vsel %vm411_vm1, %v886_v0, 0.0 }
 0x195   : > { %887 = vpow2.f32 %v466_v1  ;;  %481 = vadd.xlane.f32.xlu2 %v480_v2 }
 0x196   : > { %889 = vpow2.f32 %v432_v7 }
 0x197   : > { %891 = vpow2.f32 %v434_v8 }
 0x198   : > { %893 = vpow2.f32 %v436_v9 }
 0x199   : > { %895 = vpow2.f32 %v438_v12 }
 0x19b   : > { %v888_v3 = vpop.eup %887 }
 0x19c   : > { %v483_v5 = vsel %vm411_vm1, %v888_v3, 0.0  ;;  %v529_v6 = vpack.c.bf16 %v888_v3, %v886_v0  ;;  %v890_v10 = vpop.eup %889 }
 0x19d   : > { %490 = vadd.xlane.f32.xlu2 %v489_v4  ;;  %484 = vadd.xlane.f32.xlu1 %v483_v5  ;;  %v892_v11 = vpop.eup %891  ;;  %v476_v22 = vmul.f32 %v890_v10, %v472_v20 }
 0x19e   : > { %839 = vmatmul.msk.bf16.vlgmr.msra.gmra.mxu1 %vm411_vm1, %v529_v6  ;;  %v894_v13 = vpop.eup %893  ;;  %v477_v34 = vmul.f32 %v892_v11, %v473_v29 }
 0x19f   : > { %v896_v14 = vpop.eup %895  ;;  %v478_v16 = vmul.f32 %v894_v13, %v474_v15 }
 0x1a0   : > { %v479_v33 = vmul.f32 %v896_v14, %v475_v28 }
 0x1b5   : > { %507 = vperm.xlu2 %878, %v890_v10  }
 0x1b6   : > { %512 = vperm.xlu1 %880, %v892_v11  }
 0x1bd   : > { %517 = vperm.xlu2 %878, %v894_v13  }
 0x1c5   : > { %522 = vperm.xlu2 %878, %v896_v14  }
 0x1f6   : > { %v488_v17 = vpop.xlane.xlu0 %487 }
 0x1f7   : > { %v494_v18 = vadd.f32 %v488_v17, %v478_v16 }
 0x1f9   : > { %499 = vst.msk [vmem:[#allocation3 + $0x10] sm:$0xff] %vm353_vm0, %v494_v18 }
 0x200   : > { %v573_v19 = vld [vmem:[#allocation3 + $0x10] sm:$0xff] }
 0x201   : > { %897 = vrcp.f32 %v573_v19  ;;  %v614_v27 = vand.u32 2147483648, %v573_v19  ;;  %v612_v31 = vand.u32 2147483647, %v573_v19  ;;  %vm608_vm3 = vweird.f32 %v573_v19 }
 0x203   : > { %v615_v35 = vor.u32 1.1754944e-38, %v614_v27  ;;  %vm613_vm5 = vcmp.eq.f32.partialorder %v612_v31, 8.507059e+37 }
 0x207   : > { %v898_v21 = vpop.eup %897 }
 0x208   : > { %v482_v23 = vpop.xlane.xlu2 %481  ;;  %v604_v24 = vmul.f32 %v898_v21, %v573_v19  ;;  %vm609_vm2 = vweird.f32 %v898_v21 }
 0x209   : > { %v492_v25 = vadd.f32 %v482_v23, %v476_v22  ;;  %vm610_vm4 = vmor %vm608_vm3, %vm609_vm2 }
 0x20a   : > { %v605_v26 = vsub.f32 1.0, %v604_v24 }
 0x20b   : > { %497 = vst.msk [vmem:[#allocation3] sm:$0xff] %vm353_vm0, %v492_v25 }
 0x20c   : > { %v606_v30 = vmul.f32 %v898_v21, %v605_v26 }
 0x20e   : > { %v607_v32 = vadd.f32 %v898_v21, %v606_v30 }
 0x20f   : > { %v551_v17 = vpop.f32.mrf.mxu3 }
 0x210   : > { %v491_v36 = vpop.xlane.xlu2 %490  ;;  %v485_v37 = vpop.xlane.xlu1 %484  ;;  %v611_v38 = vsel %vm610_vm4, %v898_v21, %v607_v32 }
 0x211   : > { %v495_v39 = vadd.f32 %v491_v36, %v479_v33  ;;  %v493_v40 = vadd.f32 %v485_v37, %v477_v34  ;;  %v616_v41 = vsel %vm613_vm5, %v615_v35, %v611_v38 }
 0x212   : > { %647 = vperm.xlu1 %880, %v616_v41   ;;  %v571_v42 = vld [vmem:[#allocation3] sm:$0xff] }
 0x213   : > { %500 = vst.msk [vmem:[#allocation3 + $0x18] sm:$0xff] %vm353_vm0, %v495_v39  ;;  %899 = vrcp.f32 %v571_v42  ;;  %v586_v48 = vand.u32 2147483648, %v571_v42  ;;  %v584_v50 = vand.u32 2147483647, %v571_v42  ;;  %vm580_vm7 = vweird.f32 %v571_v42 }
 0x214   : > { %498 = vst.msk [vmem:[#allocation3 + $0x8] sm:$0xff] %vm353_vm0, %v493_v40 }
 0x215   : > { %v587_v53 = vor.u32 1.1754944e-38, %v586_v48  ;;  %vm585_vm9 = vcmp.eq.f32.partialorder %v584_v50, 8.507059e+37 }
 0x217   : > { %v553_v27 = vpop.f32.mrf.mxu3 }
 0x218   : > { %v508_v11 = vpop.permute.xlu2 %507 }
 0x219   : > { %v900_v43 = vpop.eup %899  ;;  %v525_v31 = vmul.f32 0.0, %v508_v11 }
 0x21a   : > { %v576_v44 = vmul.f32 %v900_v43, %v571_v42  ;;  %v574_v45 = vld [vmem:[#allocation3 + $0x18] sm:$0xff]  ;;  %vm581_vm6 = vweird.f32 %v900_v43 }
 0x21b   : > { %v572_v46 = vld [vmem:[#allocation3 + $0x8] sm:$0xff]  ;;  %901 = vrcp.f32 %v574_v45  ;;  %vm582_vm8 = vmor %vm580_vm7, %vm581_vm6  ;;  %v628_v6 = vand.u32 2147483648, %v574_v45  ;;  %vm622_vm15 = vweird.f32 %v574_v45  ;;  %v626_v7 = vand.u32 2147483647, %v574_v45  ;;  %v546_v13 = vpop.f32.mrf.mxu1 }
 0x21c   : > { %v577_v47 = vsub.f32 1.0, %v576_v44  ;;  %903 = vrcp.f32 %v572_v46  ;;  %v600_v61 = vand.u32 2147483648, %v572_v46  ;;  %v598_v63 = vand.u32 2147483647, %v572_v46 }
 0x21d   : > { %vm594_vm11 = vweird.f32 %v572_v46  ;;  %v629_v9 = vor.u32 1.1754944e-38, %v628_v6  ;;  %vm627_vm1 = vcmp.eq.f32.partialorder %v626_v7, 8.507059e+37  ;;  %v556_v32 = vadd.f32 %v546_v13, %v525_v31 }
 0x21e   : > { %v578_v49 = vmul.f32 %v900_v43, %v577_v47  ;;  %v601_v2 = vor.u32 1.1754944e-38, %v600_v61  ;;  %vm599_vm13 = vcmp.eq.f32.partialorder %v598_v63, 8.507059e+37 }
 0x220   : > { %v579_v51 = vadd.f32 %v900_v43, %v578_v49  ;;  %v518_v12 = vpop.permute.xlu2 %517 }
 0x221   : > { %v902_v52 = vpop.eup %901  ;;  %v527_v15 = vmul.f32 0.0, %v518_v12 }
 0x222   : > { %v904_v54 = vpop.eup %903  ;;  %v583_v55 = vsel %vm582_vm8, %v900_v43, %v579_v51  ;;  %v618_v56 = vmul.f32 %v902_v52, %v574_v45  ;;  %vm623_vm14 = vweird.f32 %v902_v52 }
 0x223   : > { %v588_v57 = vsel %vm585_vm9, %v587_v53, %v583_v55  ;;  %v590_v58 = vmul.f32 %v904_v54, %v572_v46  ;;  %vm595_vm10 = vweird.f32 %v904_v54  ;;  %vm624_vm0 = vmor %vm622_vm15, %vm623_vm14  ;;  %v558_v19 = vadd.f32 %v551_v17, %v527_v15  ;;  %v548_v21 = vpop.f32.mrf.mxu1 }
 0x224   : > { %637 = vperm.xlu0 %879, %v588_v57   ;;  %v619_v60 = vsub.f32 1.0, %v618_v56  ;;  %vm596_vm12 = vmor %vm594_vm11, %vm595_vm10 }
 0x225   : > { %v591_v59 = vsub.f32 1.0, %v590_v58 }
 0x226   : > { %v620_v1 = vmul.f32 %v902_v52, %v619_v60 }
 0x227   : > { %v592_v62 = vmul.f32 %v904_v54, %v591_v59 }
 0x228   : > { %v621_v5 = vadd.f32 %v902_v52, %v620_v1  ;;  %v513_v14 = vpop.permute.xlu1 %512  ;;  %v523_v16 = vpop.permute.xlu2 %522 }
 0x229   : > { %v593_v0 = vadd.f32 %v904_v54, %v592_v62  ;;  %v526_v18 = vmul.f32 0.0, %v513_v14  ;;  %v528_v26 = vmul.f32 0.0, %v523_v16 }
 0x22a   : > { %v625_v8 = vsel %vm624_vm0, %v902_v52, %v621_v5 }
 0x22b   : > { %v597_v3 = vsel %vm596_vm12, %v904_v54, %v593_v0  ;;  %v630_v10 = vsel %vm627_vm1, %v629_v9, %v625_v8  ;;  %v557_v23 = vadd.f32 %v548_v21, %v526_v18  ;;  %v559_v28 = vadd.f32 %v553_v27, %v528_v26 }
 0x22c   : > { %v602_v4 = vsel %vm599_vm13, %v601_v2, %v597_v3 }
 0x22d   : > { %642 = vperm.xlu2 %878, %v602_v4  }
 0x235   : > { %652 = vperm.xlu2 %878, %v630_v10  }
 0x284   : > { %v648_v20 = vpop.permute.xlu1 %647 }
 0x285   : > { %v657_v22 = vmul.f32 %v648_v20, %v558_v19 }
 0x287   : > { %661 = vst [vmem:[%s346_s28 + $0x10] sm:$0xff] %v657_v22  ;;  %v643_v24 = vpop.permute.xlu2 %642 }
 0x288   : > { %v656_v25 = vmul.f32 %v643_v24, %v557_v23 }
 0x28a   : > { %660 = vst [vmem:[%s346_s28 + $0x8] sm:$0xff] %v656_v25 }
 0x28f   : > { %v653_v29 = vpop.permute.xlu2 %652 }
 0x290   : > { %v658_v30 = vmul.f32 %v653_v29, %v559_v28 }
 0x292   : > { %662 = vst [vmem:[%s346_s28 + $0x18] sm:$0xff] %v658_v30 }
 0x296   : > { %v638_v33 = vpop.permute.xlu0 %637 }
 0x297   : > { %v655_v34 = vmul.f32 %v638_v33, %v556_v32 }
 0x299   : > { %659 = vst [vmem:[%s346_s28] sm:$0xff] %v655_v34 }
 0x29a PF: > { %s13_s14 = sadd.s32 1, %s927_s14   ;;  %s1051_s12 = smov %s923_s13 }
 0x29b   : > { %p10_p5 = scmp.ge.s32.totalorder %s13_s14, 4   ;;  %s1052_s13 = smov %s1054_s15 }
 0x29d   :  { %12 = sbr.rel (!%p10_p5) target bundleno = 2 (0x2), region = 76 }

// kernel: global_attention_forward.5
= control target key start
LH: loop header
LB: loop body
LE: loop exit
PB: predicated region body
PF: predicated region fallthrough
CT: control target
= control target key end

     0   :  { %s602_s15 = smov 0   ;;  %s681_s0 = inlined_call_operand.vmem [shape: f32[4,8,342], index: 0, kind: input, shape index: {}]   ;;  %s682_s1 = inlined_call_operand.vmem [shape: f32[4,8,342], index: 1, kind: input, shape index: {}]   ;;  %s683_s2 = inlined_call_operand.vmem [shape: bf16[8,72], index: 2, kind: input, shape index: {}]   ;;  %s684_s3 = inlined_call_operand.vmem [shape: f32[8,1], index: 3, kind: input, shape index: {}]   ;;  %s685_s4 = inlined_call_operand.vmem [shape: f32[4,8,288], index: 4, kind: output, shape index: {}]  }
   0x1 LB: > { %s487_s16 = sadd.s32 4294967295, %s566_s15   ;;  %p491_p0 = scmp.ge.s32.totalorder %s566_s15, 1  ;;  %s566_s15 = sphi %s602_s15, %s14_s15  }
   0x2   : > { %p172_p1 = scmp.lt.s32.totalorder %s566_s15, 5 }
   0x4   : > { %p173_p2 = pnand %p491_p0, %p172_p1 }
   0x5   : > { %p203_p3 = scmp.lt.s32.totalorder (!%p173_p2), %s487_s16, 3  ;;  %s568_s21 = smov (!%p173_p2), 91  }
   0x6   : > { %176 = sbr.rel (%p173_p2) target bundleno = 313 (0x139), region = 36  ;;  %s569_s22 = smov (!%p173_p2), 90  }
   0x7   : > { %s570_s23 = smov (!%p173_p2), 109   ;;  %s571_s24 = smov (!%p173_p2), 92  }
   0x8   : > { %s572_s25 = smov (!%p173_p2), 108   ;;  %s573_s26 = smov (!%p173_p2), 126  }
   0x9   : > { %s574_s27 = smov (!%p173_p2), 110   ;;  %s575_s28 = smov (!%p173_p2), 127  }
   0xb   : > { %s687_s16 = smov (!%p203_p3, %s487_s16), 3  ;;  %vm347_vm0 = vcmask 1043456   ;;  %vm315_vm1 = vcmask 736256   ;;  %vm303_vm2 = vcmask 744448   ;;  %vm291_vm3 = vcmask 752640   ;;  %v337_v28 = vld [vmem:[%s684_s3] sm:$0xff] }
   0xc   : > { %s610_s17 = smul.u32 24, %s687_s16  ;;  %v576_v33 = vmov 0   ;;  %vm279_vm4 = vcmask 883712   ;;  %vm267_vm5 = vcmask 891904   ;;  %vm255_vm6 = vcmask 900096  }
   0xd   : > { %558 = vset.pattern.permute.xlu1 %v576_v33  ;;  %559 = vset.pattern.permute.xlu0 %v576_v33  ;;  %vm243_vm7 = vcmask 1031168   ;;  %vm343_vm8 = vcmask 588800   ;;  %vm231_vm9 = vcmask 1039360   ;;  %vm418_vm10 = vcmask 261120  }
   0xe   : > { %s207_s20 = scalar_lea.vmem %s681_s0, %s610_s17  ;;  %s649_s5 = scalar_lea.vmem %s682_s1, %s610_s17 }
   0xf   : > { %v616_v0 = vld [vmem:[%s207_s20] sm:$0xff]  ;;  %v618_v1 = vld [vmem:[%s207_s20 + $0x10] sm:$0xff]  ;;  %v623_v3 = vld [vmem:[%s207_s20 + $0x8] sm:$0xff]  ;;  %s217_s12 = scalar_lea.vmem %s685_s4, %s610_s17 }
  0x10   : > { %v528_v2 = vpack.i.bf16 %v616_v0, %v618_v1  ;;  %v397_v29 = vld [vmem:[%s649_s5 + $0x8] sm:$0xff]  ;;  %v396_v34 = vld [vmem:[%s649_s5] sm:$0xff]  ;;  %v398_v43 = vld [vmem:[%s649_s5 + $0x10] sm:$0xff] }
  0x12   : > { %529 = vrot.lane.b32.xlu1 %v528_v2, %s568_s21  ;;  %519 = vrot.lane.b32.xlu0 %v528_v2, %s569_s22 }
  0x13   : > { %534 = vrot.lane.b32.xlu2 %v528_v2, %s570_s23 }
  0x1a   : > { %311 = vrot.lane.b32.xlu1 %v623_v3, %s569_s22  ;;  %524 = vrot.lane.b32.xlu0 %v528_v2, %s571_s24 }
  0x1b   : > { %539 = vrot.lane.b32.xlu2 %v528_v2, %s572_s25 }
  0x22   : > { %299 = vrot.lane.b32.xlu1 %v623_v3, %s568_s21  ;;  %287 = vrot.lane.b32.xlu0 %v623_v3, %s571_s24 }
  0x23   : > { %544 = vrot.lane.b32.xlu2 %v528_v2, %s573_s26 }
  0x2a   : > { %263 = vrot.lane.b32.xlu1 %v623_v3, %s570_s23  ;;  %549 = vrot.lane.b32.xlu0 %v528_v2, %s574_s27 }
  0x2b   : > { %275 = vrot.lane.b32.xlu2 %v623_v3, %s572_s25 }
  0x32   : > { %239 = vrot.lane.b32.xlu1 %v623_v3, %s573_s26  ;;  %554 = vrot.lane.b32.xlu0 %v528_v2, %s575_s28 }
  0x33   : > { %251 = vrot.lane.b32.xlu2 %v623_v3, %s574_s27 }
  0x3a   : > { %227 = vrot.lane.b32.xlu0 %v623_v3, %s575_s28  ;;  %340 = vperm.xlu1 %558, %v337_v28  }
  0x3b   : > { %402 = vrot.lane.b32.xlu2 %v396_v34, %s570_s23 }
  0x42   : > { %404 = vrot.lane.b32.xlu0 %v397_v29, %s570_s23  ;;  %406 = vrot.lane.b32.xlu1 %v398_v43, %s570_s23 }
  0x6d   : > { %v634_v4 = vpop.permute.xlu2 %534 }
  0x6e   : > { %v536_v22 = vunpack.i.l.bf16 %v634_v4  ;;  %v537_v44 = vunpack.i.h.bf16 %v634_v4 }
  0x75   : > { %v636_v7 = vpop.permute.xlu2 %539 }
  0x76   : > { %v541_v23 = vunpack.i.l.bf16 %v636_v7  ;;  %v542_v41 = vunpack.i.h.bf16 %v636_v7 }
  0x78   : > { %v329_v32 = vpack.c.bf16 %v541_v23, %v536_v22 }
  0x7d   : > { %v639_v20 = vpop.permute.xlu2 %544 }
  0x7e   : > { %v546_v45 = vunpack.i.l.bf16 %v639_v20  ;;  %v547_v58 = vunpack.i.h.bf16 %v639_v20 }
  0x84   : > { %v530_v5 = vpop.permute.xlu1 %529  ;;  %v520_v6 = vpop.permute.xlu0 %519 }
  0x85   : > { %v521_v8 = vunpack.i.l.bf16 %v520_v6  ;;  %v522_v11 = vunpack.i.h.bf16 %v520_v6  ;;  %v531_v14 = vunpack.i.l.bf16 %v530_v5  ;;  %v532_v26 = vunpack.i.h.bf16 %v530_v5  ;;  %v276_v42 = vpop.permute.xlu2 %275 }
  0x86   : > { %v280_v46 = vsel %vm279_vm4, %v542_v41, %v276_v42  ;;  %v281_v49 = vsel %vm279_vm4, %v276_v42, %v541_v23 }
  0x87   : > { %v335_v9 = vpack.c.bf16 %v521_v8, %v521_v8 }
  0x89   : > { %v355_v10 = vsel %vm347_vm0, %v335_v9, 0 }
  0x8a   : > { %386 = vmatpush.bf16.msra.mxu2 %v355_v10 }
  0x8c   : > { %v312_v12 = vpop.permute.xlu1 %311  ;;  %v525_v13 = vpop.permute.xlu0 %524 }
  0x8d   : > { %v316_v15 = vsel %vm315_vm1, %v522_v11, %v312_v12  ;;  %v317_v16 = vsel %vm315_vm1, %v312_v12, %v521_v8  ;;  %v526_v17 = vunpack.i.l.bf16 %v525_v13  ;;  %v527_v27 = vunpack.i.h.bf16 %v525_v13  ;;  %v252_v57 = vpop.permute.xlu2 %251  ;;  %v336_v8 = vld [vmem:[%s683_s2] sm:$0xf] }
  0x8e   : > { %v333_v18 = vpack.c.bf16 %v316_v15, %v316_v15  ;;  %v334_v19 = vpack.c.bf16 %v317_v16, %v317_v16 }
  0x8f   : > { %v332_v21 = vpack.c.bf16 %v531_v14, %v526_v17 }
  0x90   : > { %v349_v24 = vsel %vm347_vm0, %v333_v18, 0  ;;  %v352_v25 = vsel %vm347_vm0, %v334_v19, 0 }
  0x91   : > { %360 = vmatpush.bf16.msra.mxu0 %v349_v24  ;;  %373 = vmatpush.bf16.msra.mxu1 %v352_v25 }
  0x92   : > { %387 = vmatpush.bf16.msra.mxu2 %v332_v21 }
  0x94   : > { %v300_v30 = vpop.permute.xlu1 %299  ;;  %v288_v31 = vpop.permute.xlu0 %287 }
  0x95   : > { %v304_v35 = vsel %vm303_vm2, %v532_v26, %v300_v30  ;;  %v305_v36 = vsel %vm303_vm2, %v300_v30, %v531_v14  ;;  %v292_v37 = vsel %vm291_vm3, %v527_v27, %v288_v31  ;;  %v293_v38 = vsel %vm291_vm3, %v288_v31, %v526_v17  ;;  %v403_v15 = vpop.permute.xlu2 %402 }
  0x96   : > { %388 = vmatpush.bf16.msra.mxu2 %v329_v32  ;;  %v330_v39 = vpack.c.bf16 %v304_v35, %v292_v37  ;;  %v331_v40 = vpack.c.bf16 %v305_v36, %v293_v38 }
  0x98   : > { %361 = vmatpush.bf16.msra.mxu0 %v330_v39  ;;  %374 = vmatpush.bf16.msra.mxu1 %v331_v40 }
  0x9c   : > { %v264_v47 = vpop.permute.xlu1 %263  ;;  %v550_v48 = vpop.permute.xlu0 %549 }
  0x9d   : > { %v268_v50 = vsel %vm267_vm5, %v537_v44, %v264_v47  ;;  %v269_v51 = vsel %vm267_vm5, %v264_v47, %v536_v22  ;;  %v551_v52 = vunpack.i.l.bf16 %v550_v48  ;;  %v552_v56 = vunpack.i.h.bf16 %v550_v48 }
  0x9e   : > { %v327_v53 = vpack.c.bf16 %v280_v46, %v268_v50  ;;  %v328_v54 = vpack.c.bf16 %v281_v49, %v269_v51 }
  0x9f   : > { %v326_v55 = vpack.c.bf16 %v551_v52, %v546_v45  ;;  %v256_v59 = vsel %vm255_vm6, %v552_v56, %v252_v57  ;;  %v257_v62 = vsel %vm255_vm6, %v252_v57, %v551_v52 }
  0xa0   : > { %362 = vmatpush.bf16.msra.mxu0 %v327_v53  ;;  %375 = vmatpush.bf16.msra.mxu1 %v328_v54 }
  0xa1   : > { %389 = vmatpush.bf16.msra.mxu2 %v326_v55 }
  0xa4   : > { %v240_v60 = vpop.permute.xlu1 %239  ;;  %v555_v61 = vpop.permute.xlu0 %554 }
  0xa5   : > { %v244_v63 = vsel %vm243_vm7, %v547_v58, %v240_v60  ;;  %v245_v2 = vsel %vm243_vm7, %v240_v60, %v546_v45  ;;  %v556_v4 = vunpack.i.l.bf16 %v555_v61  ;;  %v557_v9 = vunpack.i.h.bf16 %v555_v61 }
  0xa6   : > { %v324_v5 = vpack.c.bf16 %v256_v59, %v244_v63  ;;  %v325_v6 = vpack.c.bf16 %v257_v62, %v245_v2 }
  0xa7   : > { %v323_v7 = vpack.c.bf16 %v556_v4, %v618_v1 }
  0xa8   : > { %363 = vmatpush.bf16.msra.mxu0 %v324_v5  ;;  %376 = vmatpush.bf16.msra.mxu1 %v325_v6 }
  0xa9   : > { %390 = vmatpush.bf16.msra.mxu2 %v323_v7 }
  0xac   : > { %v228_v10 = vpop.permute.xlu0 %227  ;;  %497 = vmatmul.msk.bf16.vlgmr.msra.gmra.mxu2 %vm343_vm8, %v336_v8  ;;  %v341_v1 = vpop.permute.xlu1 %340 }
  0xad   : > { %v232_v11 = vsel %vm231_vm9, %v557_v9, %v228_v10  ;;  %v233_v12 = vsel %vm231_vm9, %v228_v10, %v556_v4 }
  0xae   : > { %v321_v13 = vpack.c.bf16 %v232_v11, %v616_v0  ;;  %v322_v14 = vpack.c.bf16 %v233_v12, %v623_v3 }
  0xb0   : > { %364 = vmatpush.bf16.msra.mxu0 %v321_v13  ;;  %377 = vmatpush.bf16.msra.mxu1 %v322_v14 }
  0xb3   : > { %495 = vmatmul.msk.bf16.vlgmr.msra.gmra.mxu0 %vm343_vm8, %v336_v8  ;;  %496 = vmatmul.msk.bf16.vlgmr.msra.gmra.mxu1 %vm343_vm8, %v336_v8 }
  0xb4   : > { %v407_v16 = vpop.permute.xlu1 %406  ;;  %v405_v17 = vpop.permute.xlu0 %404 }
  0xb5   : > { %v408_v22 = vsel %vm267_vm5, %v403_v15, %v405_v17  ;;  %v409_v23 = vsel %vm267_vm5, %v405_v17, %v407_v16 }
 0x12f   : > { %v392_v18 = vpop.f32.mrf.mxu2 }
 0x130   : > { %v393_v19 = vadd.f32 %v392_v18, %v341_v1  ;;  %v366_v20 = vpop.f32.mrf.mxu0  ;;  %v379_v21 = vpop.f32.mrf.mxu1 }
 0x131   : > { %v367_v0 = vadd.f32 %v366_v20, %v341_v1  ;;  %v380_v24 = vadd.f32 %v379_v21, %v341_v1 }
 0x132   : > { %v415_v3 = vadd.f32 %v407_v16, %v393_v19 }
 0x133   : > { %v413_v25 = vadd.f32 %v408_v22, %v367_v0  ;;  %v414_v26 = vadd.f32 %v409_v23, %v380_v24 }
 0x134   : > { %419 = vst.msk [vmem:[%s217_s12 + $0x10] sm:$0xff] %vm418_vm10, %v415_v3 }
 0x135   : > { %416 = vst [vmem:[%s217_s12] sm:$0xff] %v413_v25 }
 0x136   : > { %417 = vst [vmem:[%s217_s12 + $0x8] sm:$0xff] %v414_v26 }
 0x137   : > { %v394_v27 = vpop.f32.mrf.mxu2 }
 0x138   : > { %v368_v28 = vpop.f32.mrf.mxu0  ;;  %v381_v29 = vpop.f32.mrf.mxu1 }
 0x139 PF: > { %s14_s15 = sadd.s32 1, %s566_s15  }
 0x13a   : > { %p11_p4 = scmp.ge.s32.totalorder %s14_s15, 6  }
 0x13c   :  { %13 = sbr.rel (!%p11_p4) target bundleno = 1 (0x1), region = 69 }

</bundles_post_ra>
